<compile_context>
chip_gen: v7x
topology: tpu7x:2x2x1
jax: 0.10.0
libtpu: 0.0.40
codegen_flags: <defaults>
</compile_context>

<pallas_src>
import functools
import math

import jax
import jax.numpy as jnp
from jax import lax
from jax.experimental import pallas as pl
from jax.experimental.pallas import tpu as pltpu


def _round_up(x, m):
    return (x + m - 1) // m * m


def _pick_batch_chunk(n, t):
    """Sequences per grid chunk.

    Keep the stacked row slab (chunk*T rows) reasonably large for MXU
    occupancy, but prefer >= 2 chunks so the parallel grid axis can feed both
    TensorCores on v7x. Chunk must divide N and give sublane-legal blocks.
    """
    divisors = [b for b in range(1, n + 1)
                if n % b == 0 and ((b * t) % 8 == 0 or b == n)]
    multi = [b for b in divisors if n // b >= 2]
    cands = multi if multi else divisors
    fitting = [b for b in cands if b * t <= 256]
    return max(fitting) if fitting else min(cands)


def _layernorm(x, g, b, eps=1e-5):
    """LayerNorm over the last dim. x: (R, E) f32, g/b: (1, E) f32."""
    mean = jnp.mean(x, axis=-1, keepdims=True)
    xc = x - mean
    var = jnp.mean(xc * xc, axis=-1, keepdims=True)
    return xc * lax.rsqrt(var + eps) * g + b


# ----------------------------------------------------------------------------
# Fully fused decoder-stack kernel
#   grid = (batch_chunks, num_layers); x resident in VMEM scratch over layers.
# ----------------------------------------------------------------------------

def _decoder_stack_kernel(
        emb_ref, pe_ref, feat_ref, vpw_ref, vpb_ref,
        wqkv_ref, bqkv_ref, wo_ref, bo_ref, wc_ref, bc_ref,
        ln1g_ref, ln1b_ref, ln2g_ref, ln2b_ref,
        w1_ref, b1_ref, w2_ref, b2_ref, ln3g_ref, ln3b_ref,
        wout_ref, bout_ref,
        scores_ref,
        x_scr, mem_scr,
        *, num_heads, seq_len, b_blk):
    c = pl.program_id(0)          # batch chunk (parallel)
    l = pl.program_id(1)          # decoder layer (arbitrary / sequential)
    t = seq_len
    e = x_scr.shape[1]
    h = num_heads
    dh = e // h
    scale = 1.0 / math.sqrt(dh)   # folded into q (Python scalar, no const capture)

    # ---- layer 0 only: embedding + positional encoding, visual projection ----
    @pl.when(l == 0)
    def _init():
        emb = emb_ref[...]                                    # (R, E) f32
        pe = pe_ref[...]                                      # (T, E) f32
        if b_blk == 1:
            x0 = emb + pe
        else:
            x0 = jnp.concatenate(
                [emb[n * t:(n + 1) * t, :] + pe for n in range(b_blk)], axis=0)
        x_scr[...] = x0
        feat = feat_ref[pl.ds(c * b_blk, b_blk), :].astype(jnp.bfloat16)
        mem_scr[...] = jnp.dot(feat, vpw_ref[...],
                               preferred_element_type=jnp.float32) + vpb_ref[...]

    x = x_scr[...]                                            # (R, E) f32
    x_bf = x.astype(jnp.bfloat16)

    # ---- self-attention: fused QKV projection over the whole row slab ----
    qkv = jnp.dot(x_bf, wqkv_ref[0],
                  preferred_element_type=jnp.float32) + bqkv_ref[0]     # (R, 3E)

    # causal mask built in-kernel (no (T,T) mask DMA)
    row = lax.broadcasted_iota(jnp.int32, (t, t), 0)
    col = lax.broadcasted_iota(jnp.int32, (t, t), 1)
    keep = row >= col

    wo_all = wo_ref[0]                                        # (H, dh, E) bf16
    attn_o = None
    for hh in range(h):
        lo = hh * dh
        wo_h = wo_all[hh]                                     # (dh, E) bf16
        head_rows = []
        for n in range(b_blk):                                # softmax is per-sequence
            rs = slice(n * t, (n + 1) * t)
            q = (qkv[rs, lo:lo + dh] * scale).astype(jnp.bfloat16)
            k = qkv[rs, e + lo:e + lo + dh].astype(jnp.bfloat16)
            v = qkv[rs, 2 * e + lo:2 * e + lo + dh].astype(jnp.bfloat16)
            s = lax.dot_general(q, k, (((1,), (1,)), ((), ())),
                                preferred_element_type=jnp.float32)     # (T, T)
            s = jnp.where(keep, s, -1e30)
            s = s - jnp.max(s, axis=-1, keepdims=True)
            p = jnp.exp(s)
            p = p * pl.reciprocal(jnp.sum(p, axis=-1, keepdims=True), approx=True)
            head_rows.append(jnp.dot(p.astype(jnp.bfloat16), v,
                                     preferred_element_type=jnp.float32))  # (T, dh)
        head_all = head_rows[0] if b_blk == 1 else jnp.concatenate(head_rows, axis=0)
        # output projection accumulated per head -> no lane-wise head concat
        contrib = jnp.dot(head_all.astype(jnp.bfloat16), wo_h,
                          preferred_element_type=jnp.float32)            # (R, E)
        attn_o = contrib if attn_o is None else attn_o + contrib
    attn_o = attn_o + bo_ref[0]

    x1 = _layernorm(x + attn_o, ln1g_ref[0], ln1b_ref[0])

    # ---- cross-attention with length-1 memory: softmax over one key == 1, so
    #      the sub-layer is a single affine map (W_cross pre-folded at init) ----
    cross = jnp.dot(mem_scr[...].astype(jnp.bfloat16), wc_ref[0],
                    preferred_element_type=jnp.float32) + bc_ref[0]      # (b_blk, E)
    if b_blk == 1:
        x1c = x1 + cross
    else:
        x1c = jnp.concatenate(
            [x1[n * t:(n + 1) * t, :] + cross[n:n + 1, :] for n in range(b_blk)],
            axis=0)
    x2 = _layernorm(x1c, ln2g_ref[0], ln2b_ref[0])

    # ---- FFN + residual + LayerNorm3 ----
    hmid = jnp.dot(x2.astype(jnp.bfloat16), w1_ref[0],
                   preferred_element_type=jnp.float32) + b1_ref[0]
    hmid = jnp.maximum(hmid, 0.0)
    y = jnp.dot(hmid.astype(jnp.bfloat16), w2_ref[0],
                preferred_element_type=jnp.float32) + b2_ref[0]
    x3 = _layernorm(x2 + y, ln3g_ref[0], ln3b_ref[0])

    x_scr[...] = x3                                           # stays resident in VMEM

    # ---- last layer only: vocab head, lane-dense padded output ----
    @pl.when(l == pl.num_programs(1) - 1)
    def _final():
        scores_ref[...] = jnp.dot(x3.astype(jnp.bfloat16), wout_ref[...],
                                  preferred_element_type=jnp.float32) + bout_ref[...]


# ----------------------------------------------------------------------------
# Model glue (embedding gather / reshapes / PE table in plain JAX)
# ----------------------------------------------------------------------------

def make_positional_encoding(seq_len, embed_dim):
    pos = jnp.arange(seq_len, dtype=jnp.float32)[:, None]
    i = jnp.arange(0, embed_dim, 2, dtype=jnp.float32)
    freq = jnp.power(10000.0, -i / embed_dim)
    args = pos * freq[None, :]
    pe = jnp.zeros((seq_len, embed_dim), jnp.float32)
    pe = pe.at[:, 0::2].set(jnp.sin(args))
    pe = pe.at[:, 1::2].set(jnp.cos(args)[:, : embed_dim // 2])  # odd-dim safe
    return pe


def captioning_transformer_forward(params, captions, features, *, num_heads,
                                   vocab_size):
    """captions: (N, T) int32, features: (N, D) f32 -> scores (N, T, V) f32."""
    n, t = captions.shape
    e = params["emb"].shape[1]
    d = features.shape[1]
    num_layers = params["wqkv"].shape[0]
    ff = params["w1"].shape[2]
    vpad = params["out_w"].shape[1]
    dh = e // num_heads

    # word-embedding lookup stays in XLA (gather); PE add is fused in-kernel
    # TODO(synk): fuse the embedding gather itself via scalar-prefetched ids.
    emb = jnp.take(params["emb"], captions, axis=0).reshape(n * t, e)
    pe = make_positional_encoding(t, e)

    b_blk = _pick_batch_chunk(n, t)
    assert n % b_blk == 0
    chunks = n // b_blk
    r_blk = b_blk * t

    kern = functools.partial(_decoder_stack_kernel, num_heads=num_heads,
                             seq_len=t, b_blk=b_blk)

    rep2 = lambda shape: pl.BlockSpec(shape, lambda c, l: (0, 0))
    lay3 = lambda shape: pl.BlockSpec(shape, lambda c, l: (l, 0, 0))
    lay4 = lambda shape: pl.BlockSpec(shape, lambda c, l: (l, 0, 0, 0))

    scores_pad = pl.pallas_call(
        kern,
        out_shape=jax.ShapeDtypeStruct((n * t, vpad), jnp.float32),
        grid_spec=pltpu.PrefetchScalarGridSpec(
            num_scalar_prefetch=0,
            grid=(chunks, num_layers),
            in_specs=[
                pl.BlockSpec((r_blk, e), lambda c, l: (c, 0)),   # emb (+PE in kernel)
                rep2((t, e)),                                    # pe
                rep2((n, d)),                                    # features (sliced in-kernel)
                rep2((d, e)),                                    # vp_w (bf16)
                rep2((1, e)),                                    # vp_b
                lay3((1, e, 3 * e)),                             # wqkv (bf16)
                lay3((1, 1, 3 * e)),                             # bqkv
                lay4((1, num_heads, dh, e)),                     # wo per-head (bf16)
                lay3((1, 1, e)),                                 # bo
                lay3((1, e, e)),                                 # w_cross (bf16, folded)
                lay3((1, 1, e)),                                 # b_cross
                lay3((1, 1, e)), lay3((1, 1, e)),                # ln1 g/b
                lay3((1, 1, e)), lay3((1, 1, e)),                # ln2 g/b
                lay3((1, e, ff)),                                # w1 (bf16)
                lay3((1, 1, ff)),                                # b1
                lay3((1, ff, e)),                                # w2 (bf16)
                lay3((1, 1, e)),                                 # b2
                lay3((1, 1, e)), lay3((1, 1, e)),                # ln3 g/b
                rep2((e, vpad)),                                 # out_w (bf16, lane-padded)
                rep2((1, vpad)),                                 # out_b
            ],
            out_specs=pl.BlockSpec((r_blk, vpad), lambda c, l: (c, 0)),
            scratch_shapes=[pltpu.VMEM((r_blk, e), jnp.float32),   # activation x
                            pltpu.VMEM((b_blk, e), jnp.float32)],  # memory (visual proj)
        ),
        compiler_params=pltpu.CompilerParams(
            dimension_semantics=("parallel", "arbitrary"),
            vmem_limit_bytes=32 * 1024 * 1024),
    )(emb, pe, features,
      params["vp_w"], params["vp_b"],
      params["wqkv"], params["bqkv"], params["wo_h"], params["bo"],
      params["w_cross"], params["b_cross"],
      params["ln1_g"], params["ln1_b"], params["ln2_g"], params["ln2_b"],
      params["w1"], params["b1"], params["w2"], params["b2"],
      params["ln3_g"], params["ln3_b"],
      params["out_w"], params["out_b"])

    return scores_pad[:, :vocab_size].reshape(n, t, vocab_size)


# ----------------------------------------------------------------------------
# Deterministic parameter initialization (module-consistent shapes / init)
# Weights stored bf16 (stacked per layer); biases / LN params f32.
# ----------------------------------------------------------------------------

def init_params(key, input_dim, wordvec_dim, num_heads, num_layers, vocab_size,
                dim_feedforward=2048):
    counter = [0]

    def nxt():
        counter[0] += 1
        return jax.random.fold_in(key, counter[0])

    def normal(shape):
        return 0.02 * jax.random.normal(nxt(), shape, jnp.float32)

    w = wordvec_dim
    dh = w // num_heads
    vpad = _round_up(vocab_size, 128)

    out_w = normal((w, vocab_size))
    out_w_pad = jnp.zeros((w, vpad), jnp.float32).at[:, :vocab_size].set(out_w)

    params = {
        "vp_w": normal((input_dim, w)).astype(jnp.bfloat16),
        "vp_b": jnp.zeros((1, w), jnp.float32),
        "emb": normal((vocab_size, w)),
        "out_w": out_w_pad.astype(jnp.bfloat16),
        "out_b": jnp.zeros((1, vpad), jnp.float32),
    }

    acc = {k: [] for k in ("wqkv", "bqkv", "wo_h", "bo", "w_cross", "b_cross",
                           "w1", "b1", "w2", "b2",
                           "ln1_g", "ln1_b", "ln2_g", "ln2_b", "ln3_g", "ln3_b")}

    for _ in range(num_layers):
        wq, wk, wv = normal((w, w)), normal((w, w)), normal((w, w))
        acc["wqkv"].append(jnp.concatenate([wq, wk, wv], axis=1))      # (E, 3E)
        acc["bqkv"].append(jnp.zeros((1, 3 * w), jnp.float32))
        acc["wo_h"].append(normal((w, w)).reshape(num_heads, dh, w))   # (H, dh, E)
        acc["bo"].append(jnp.zeros((1, w), jnp.float32))
        # length-1 cross attention folded: W_cross = Wv @ Wo, b_cross = bv @ Wo + bo
        wvc, woc = normal((w, w)), normal((w, w))
        bvc, boc = jnp.zeros((w,), jnp.float32), jnp.zeros((w,), jnp.float32)
        acc["w_cross"].append(wvc @ woc)
        acc["b_cross"].append((bvc @ woc + boc).reshape(1, w))
        acc["w1"].append(normal((w, dim_feedforward)))
        acc["b1"].append(jnp.zeros((1, dim_feedforward), jnp.float32))
        acc["w2"].append(normal((dim_feedforward, w)))
        acc["b2"].append(jnp.zeros((1, w), jnp.float32))
        for g in ("ln1_g", "ln2_g", "ln3_g"):
            acc[g].append(jnp.ones((1, w), jnp.float32))
        for b in ("ln1_b", "ln2_b", "ln3_b"):
            acc[b].append(jnp.zeros((1, w), jnp.float32))

    bf16_keys = ("wqkv", "wo_h", "w_cross", "w1", "w2")
    for k, v in acc.items():
        stacked = jnp.stack(v)
        params[k] = stacked.astype(jnp.bfloat16) if k in bf16_keys else stacked
    return params


# ----------------------------------------------------------------------------
# Main
# ----------------------------------------------------------------------------

if __name__ == "__main__":
    # Small, module-consistent shapes.
    N, T = 2, 8           # batch, caption length
    D = 64                # image feature dim (input_dim)
    W = 32                # wordvec_dim (embed_dim)
    H = 4                 # num_heads
    L = 2                 # num_layers
    V = 16                # vocab size (<NULL>, <START>, <END>, ...)
    FF = 2048             # dim_feedforward (module default)

    key = jax.random.PRNGKey(0)
    k_param, k_feat, k_cap = jax.random.split(key, 3)

    params = init_params(k_param, D, W, H, L, V, FF)
    features = jax.random.normal(k_feat, (N, D), jnp.float32)
    captions = jax.random.randint(k_cap, (N, T), 0, V, jnp.int32)

    fwd = jax.jit(functools.partial(captioning_transformer_forward,
                                    num_heads=H, vocab_size=V))
    scores = fwd(params, captions, features)
    jax.block_until_ready(scores)

    assert scores.shape == (N, T, V), scores.shape
    assert scores.dtype == jnp.float32
    assert bool(jnp.all(jnp.isfinite(scores)))
    # TODO(synk): dropout layers are implemented as identity (eval-mode semantics).
    print("KERNEL_OK")
</pallas_src>

<mosaic_0001>
module attributes {stable_mosaic.version = 11 : i64} {
  func.func @_decoder_stack_kernel(%arg0: i32, %arg1: i32, %arg2: memref<8x32xf32, #tpu.memory_space<vmem>>, %arg3: memref<8x32xf32, #tpu.memory_space<vmem>>, %arg4: memref<2x64xf32, #tpu.memory_space<vmem>>, %arg5: memref<64x32xbf16, #tpu.memory_space<vmem>>, %arg6: memref<1x32xf32, #tpu.memory_space<vmem>>, %arg7: memref<1x32x96xbf16, #tpu.memory_space<vmem>>, %arg8: memref<1x1x96xf32, #tpu.memory_space<vmem>>, %arg9: memref<1x4x8x32xbf16, #tpu.memory_space<vmem>>, %arg10: memref<1x1x32xf32, #tpu.memory_space<vmem>>, %arg11: memref<1x32x32xbf16, #tpu.memory_space<vmem>>, %arg12: memref<1x1x32xf32, #tpu.memory_space<vmem>>, %arg13: memref<1x1x32xf32, #tpu.memory_space<vmem>>, %arg14: memref<1x1x32xf32, #tpu.memory_space<vmem>>, %arg15: memref<1x1x32xf32, #tpu.memory_space<vmem>>, %arg16: memref<1x1x32xf32, #tpu.memory_space<vmem>>, %arg17: memref<1x32x2048xbf16, #tpu.memory_space<vmem>>, %arg18: memref<1x1x2048xf32, #tpu.memory_space<vmem>>, %arg19: memref<1x2048x32xbf16, #tpu.memory_space<vmem>>, %arg20: memref<1x1x32xf32, #tpu.memory_space<vmem>>, %arg21: memref<1x1x32xf32, #tpu.memory_space<vmem>>, %arg22: memref<1x1x32xf32, #tpu.memory_space<vmem>>, %arg23: memref<32x128xbf16, #tpu.memory_space<vmem>>, %arg24: memref<1x128xf32, #tpu.memory_space<vmem>>, %arg25: memref<8x128xf32, #tpu.memory_space<vmem>>, %arg26: memref<8x32xf32, #tpu.memory_space<vmem>>, %arg27: memref<1x32xf32, #tpu.memory_space<vmem>>) attributes {dimension_semantics = [#tpu.dimension_semantics<parallel>, #tpu.dimension_semantics<arbitrary>], iteration_bounds = array<i64: 2, 2>, scalar_prefetch = 0 : i64, scratch_operands = 2 : i64, tpu.core_type = #tpu.core_type<tc>, window_params = [{transform_indices = @transform_0, window_bounds = array<i64: 8, 32>}, {pipeline_mode = #tpu.pipeline_mode<synchronous>, transform_indices = @transform_1, window_bounds = array<i64: 8, 32>}, {pipeline_mode = #tpu.pipeline_mode<synchronous>, transform_indices = @transform_2, window_bounds = array<i64: 2, 64>}, {pipeline_mode = #tpu.pipeline_mode<synchronous>, transform_indices = @transform_3, window_bounds = array<i64: 64, 32>}, {pipeline_mode = #tpu.pipeline_mode<synchronous>, transform_indices = @transform_4, window_bounds = array<i64: 1, 32>}, {transform_indices = @transform_5, window_bounds = array<i64: 1, 32, 96>}, {transform_indices = @transform_6, window_bounds = array<i64: 1, 1, 96>}, {transform_indices = @transform_7, window_bounds = array<i64: 1, 4, 8, 32>}, {transform_indices = @transform_8, window_bounds = array<i64: 1, 1, 32>}, {transform_indices = @transform_9, window_bounds = array<i64: 1, 32, 32>}, {transform_indices = @transform_10, window_bounds = array<i64: 1, 1, 32>}, {transform_indices = @transform_11, window_bounds = array<i64: 1, 1, 32>}, {transform_indices = @transform_12, window_bounds = array<i64: 1, 1, 32>}, {transform_indices = @transform_13, window_bounds = array<i64: 1, 1, 32>}, {transform_indices = @transform_14, window_bounds = array<i64: 1, 1, 32>}, {transform_indices = @transform_15, window_bounds = array<i64: 1, 32, 2048>}, {transform_indices = @transform_16, window_bounds = array<i64: 1, 1, 2048>}, {transform_indices = @transform_17, window_bounds = array<i64: 1, 2048, 32>}, {transform_indices = @transform_18, window_bounds = array<i64: 1, 1, 32>}, {transform_indices = @transform_19, window_bounds = array<i64: 1, 1, 32>}, {transform_indices = @transform_20, window_bounds = array<i64: 1, 1, 32>}, {pipeline_mode = #tpu.pipeline_mode<synchronous>, transform_indices = @transform_21, window_bounds = array<i64: 32, 128>}, {pipeline_mode = #tpu.pipeline_mode<synchronous>, transform_indices = @transform_22, window_bounds = array<i64: 1, 128>}, {transform_indices = @transform_23, window_bounds = array<i64: 8, 128>}]} {
    %c0_i32 = arith.constant 0 : i32
    %0 = arith.cmpi eq, %arg1, %c0_i32 : i32
    %1 = arith.extui %0 : i1 to i32
    %c0_i32_0 = arith.constant 0 : i32
    %2 = arith.cmpi ne, %1, %c0_i32_0 : i32
    scf.if %2 {
      %c0_103 = arith.constant 0 : index
      %c0_104 = arith.constant 0 : index
      %238 = vector.load %arg2[%c0_103, %c0_104] : memref<8x32xf32, #tpu.memory_space<vmem>>, vector<8x32xf32>
      %c0_105 = arith.constant 0 : index
      %c0_106 = arith.constant 0 : index
      %239 = vector.load %arg3[%c0_105, %c0_106] : memref<8x32xf32, #tpu.memory_space<vmem>>, vector<8x32xf32>
      %240 = arith.addf %238, %239 : vector<8x32xf32>
      %c0_107 = arith.constant 0 : index
      %c0_108 = arith.constant 0 : index
      %241 = vector.load %arg26[%c0_107, %c0_108] : memref<8x32xf32, #tpu.memory_space<vmem>>, vector<8x32xf32>
      tpu.vector_store %arg26[%c0_107, %c0_108], %240 {strides = array<i32>} : memref<8x32xf32, #tpu.memory_space<vmem>>, vector<8x32xf32>,
      %c1_i32_109 = arith.constant 1 : i32
      %242 = arith.muli %arg0, %c1_i32_109 : i32
      %243 = arith.index_cast %242 : i32 to index
      %c0_110 = arith.constant 0 : index
      %244 = vector.load %arg4[%243, %c0_110] : memref<2x64xf32, #tpu.memory_space<vmem>>, vector<1x64xf32>
      %245 = arith.truncf %244 : vector<1x64xf32> to vector<1x64xbf16>
      %c0_111 = arith.constant 0 : index
      %c0_112 = arith.constant 0 : index
      %246 = vector.load %arg5[%c0_111, %c0_112] : memref<64x32xbf16, #tpu.memory_space<vmem>>, vector<64x32xbf16>
      %cst_113 = arith.constant dense<0.000000e+00> : vector<1x32xf32>
      %247 = tpu.matmul %245, %246, %cst_113 {dimension_numbers = #tpu.dot_dimension_numbers<[1], [0], [0], [1], [0, 0, 1, 1], [], []>} : vector<1x64xbf16>, vector<64x32xbf16>, vector<1x32xf32> -> vector<1x32xf32>
      %c0_114 = arith.constant 0 : index
      %c0_115 = arith.constant 0 : index
      %248 = vector.load %arg6[%c0_114, %c0_115] : memref<1x32xf32, #tpu.memory_space<vmem>>, vector<1x32xf32>
      %249 = arith.addf %247, %248 : vector<1x32xf32>
      %c0_116 = arith.constant 0 : index
      %c0_117 = arith.constant 0 : index
      %250 = vector.load %arg27[%c0_116, %c0_117] : memref<1x32xf32, #tpu.memory_space<vmem>>, vector<1x32xf32>
      tpu.vector_store %arg27[%c0_116, %c0_117], %249 {strides = array<i32>} : memref<1x32xf32, #tpu.memory_space<vmem>>, vector<1x32xf32>,
    } else {
    }
    %c0 = arith.constant 0 : index
    %c0_1 = arith.constant 0 : index
    %3 = vector.load %arg26[%c0, %c0_1] : memref<8x32xf32, #tpu.memory_space<vmem>>, vector<8x32xf32>
    %4 = arith.truncf %3 : vector<8x32xf32> to vector<8x32xbf16>
    %c0_2 = arith.constant 0 : index
    %c0_3 = arith.constant 0 : index
    %c0_4 = arith.constant 0 : index
    %5 = vector.load %arg7[%c0_2, %c0_3, %c0_4] : memref<1x32x96xbf16, #tpu.memory_space<vmem>>, vector<1x32x96xbf16>
    %6 = vector.shape_cast %5 : vector<1x32x96xbf16> to vector<32x96xbf16>
    %cst = arith.constant dense<0.000000e+00> : vector<8x96xf32>
    %7 = tpu.matmul %4, %6, %cst {dimension_numbers = #tpu.dot_dimension_numbers<[1], [0], [0], [1], [0, 0, 1, 1], [], []>} : vector<8x32xbf16>, vector<32x96xbf16>, vector<8x96xf32> -> vector<8x96xf32>
    %c0_5 = arith.constant 0 : index
    %c0_6 = arith.constant 0 : index
    %c0_7 = arith.constant 0 : index
    %8 = vector.load %arg8[%c0_5, %c0_6, %c0_7] : memref<1x1x96xf32, #tpu.memory_space<vmem>>, vector<1x1x96xf32>
    %9 = vector.shape_cast %8 : vector<1x1x96xf32> to vector<1x96xf32>
    %10 = vector.broadcast %9 : vector<1x96xf32> to vector<8x96xf32>
    %11 = arith.addf %7, %10 : vector<8x96xf32>
    %12 = tpu.iota {dimensions = array<i32: 0>} : vector<8x8xi32>
    %13 = tpu.iota {dimensions = array<i32: 1>} : vector<8x8xi32>
    %14 = arith.cmpi sge, %12, %13 : vector<8x8xi32>
    %c0_8 = arith.constant 0 : index
    %c0_9 = arith.constant 0 : index
    %c0_10 = arith.constant 0 : index
    %c0_11 = arith.constant 0 : index
    %15 = vector.load %arg9[%c0_8, %c0_9, %c0_10, %c0_11] : memref<1x4x8x32xbf16, #tpu.memory_space<vmem>>, vector<1x4x8x32xbf16>
    %16 = vector.shape_cast %15 : vector<1x4x8x32xbf16> to vector<4x8x32xbf16>
    %17 = vector.extract_strided_slice %16 {offsets = [0, 0, 0], sizes = [1, 8, 32], strides = [1, 1, 1]} : vector<4x8x32xbf16> to vector<1x8x32xbf16>
    %18 = vector.shape_cast %17 : vector<1x8x32xbf16> to vector<8x32xbf16>
    %19 = vector.extract_strided_slice %11 {offsets = [0, 0], sizes = [8, 8], strides = [1, 1]} : vector<8x96xf32> to vector<8x8xf32>
    %cst_12 = arith.constant 0.353553385 : f32
    %20 = vector.broadcast %cst_12 : f32 to vector<8x8xf32>
    %21 = arith.mulf %19, %20 : vector<8x8xf32>
    %22 = arith.truncf %21 : vector<8x8xf32> to vector<8x8xbf16>
    %23 = vector.extract_strided_slice %11 {offsets = [0, 32], sizes = [8, 8], strides = [1, 1]} : vector<8x96xf32> to vector<8x8xf32>
    %24 = arith.truncf %23 : vector<8x8xf32> to vector<8x8xbf16>
    %25 = vector.extract_strided_slice %11 {offsets = [0, 64], sizes = [8, 8], strides = [1, 1]} : vector<8x96xf32> to vector<8x8xf32>
    %26 = arith.truncf %25 : vector<8x8xf32> to vector<8x8xbf16>
    %cst_13 = arith.constant dense<0.000000e+00> : vector<8x8xf32>
    %27 = tpu.matmul %22, %24, %cst_13 {dimension_numbers = #tpu.dot_dimension_numbers<[1], [1], [0], [0], [0, 0, 1, 0], [], []>} : vector<8x8xbf16>, vector<8x8xbf16>, vector<8x8xf32> -> vector<8x8xf32>
    %cst_14 = arith.constant -1.000000e+30 : f32
    %28 = vector.broadcast %cst_14 : f32 to vector<8x8xf32>
    %29 = arith.select %14, %27, %28 : vector<8x8xi1>, vector<8x8xf32>
    %cst_15 = arith.constant dense<0xFF800000> : vector<8xf32>
    %30 = vector.multi_reduction <maximumf>, %29, %cst_15 [1] : vector<8x8xf32> to vector<8xf32>
    %31 = vector.shape_cast %30 : vector<8xf32> to vector<8x1xf32>
    %32 = vector.broadcast %31 : vector<8x1xf32> to vector<8x8xf32>
    %33 = arith.subf %29, %32 : vector<8x8xf32>
    %34 = math.exp %33 : vector<8x8xf32>
    %cst_16 = arith.constant dense<0.000000e+00> : vector<8xf32>
    %35 = vector.multi_reduction <add>, %34, %cst_16 [1] : vector<8x8xf32> to vector<8xf32>
    %36 = vector.shape_cast %35 : vector<8xf32> to vector<8x1xf32>
    %37 = tpu.reciprocal %36 {approx = true} : vector<8x1xf32> -> vector<8x1xf32>
    %38 = vector.broadcast %37 : vector<8x1xf32> to vector<8x8xf32>
    %39 = arith.mulf %34, %38 : vector<8x8xf32>
    %40 = arith.truncf %39 : vector<8x8xf32> to vector<8x8xbf16>
    %cst_17 = arith.constant dense<0.000000e+00> : vector<8x8xf32>
    %41 = tpu.matmul %40, %26, %cst_17 {dimension_numbers = #tpu.dot_dimension_numbers<[1], [0], [0], [1], [0, 0, 1, 1], [], []>} : vector<8x8xbf16>, vector<8x8xbf16>, vector<8x8xf32> -> vector<8x8xf32>
    %42 = arith.truncf %41 : vector<8x8xf32> to vector<8x8xbf16>
    %cst_18 = arith.constant dense<0.000000e+00> : vector<8x32xf32>
    %43 = tpu.matmul %42, %18, %cst_18 {dimension_numbers = #tpu.dot_dimension_numbers<[1], [0], [0], [1], [0, 0, 1, 1], [], []>} : vector<8x8xbf16>, vector<8x32xbf16>, vector<8x32xf32> -> vector<8x32xf32>
    %44 = vector.extract_strided_slice %16 {offsets = [1, 0, 0], sizes = [1, 8, 32], strides = [1, 1, 1]} : vector<4x8x32xbf16> to vector<1x8x32xbf16>
    %45 = vector.shape_cast %44 : vector<1x8x32xbf16> to vector<8x32xbf16>
    %46 = vector.extract_strided_slice %11 {offsets = [0, 8], sizes = [8, 8], strides = [1, 1]} : vector<8x96xf32> to vector<8x8xf32>
    %cst_19 = arith.constant 0.353553385 : f32
    %47 = vector.broadcast %cst_19 : f32 to vector<8x8xf32>
    %48 = arith.mulf %46, %47 : vector<8x8xf32>
    %49 = arith.truncf %48 : vector<8x8xf32> to vector<8x8xbf16>
    %50 = vector.extract_strided_slice %11 {offsets = [0, 40], sizes = [8, 8], strides = [1, 1]} : vector<8x96xf32> to vector<8x8xf32>
    %51 = arith.truncf %50 : vector<8x8xf32> to vector<8x8xbf16>
    %52 = vector.extract_strided_slice %11 {offsets = [0, 72], sizes = [8, 8], strides = [1, 1]} : vector<8x96xf32> to vector<8x8xf32>
    %53 = arith.truncf %52 : vector<8x8xf32> to vector<8x8xbf16>
    %cst_20 = arith.constant dense<0.000000e+00> : vector<8x8xf32>
    %54 = tpu.matmul %49, %51, %cst_20 {dimension_numbers = #tpu.dot_dimension_numbers<[1], [1], [0], [0], [0, 0, 1, 0], [], []>} : vector<8x8xbf16>, vector<8x8xbf16>, vector<8x8xf32> -> vector<8x8xf32>
    %cst_21 = arith.constant -1.000000e+30 : f32
    %55 = vector.broadcast %cst_21 : f32 to vector<8x8xf32>
    %56 = arith.select %14, %54, %55 : vector<8x8xi1>, vector<8x8xf32>
    %cst_22 = arith.constant dense<0xFF800000> : vector<8xf32>
    %57 = vector.multi_reduction <maximumf>, %56, %cst_22 [1] : vector<8x8xf32> to vector<8xf32>
    %58 = vector.shape_cast %57 : vector<8xf32> to vector<8x1xf32>
    %59 = vector.broadcast %58 : vector<8x1xf32> to vector<8x8xf32>
    %60 = arith.subf %56, %59 : vector<8x8xf32>
    %61 = math.exp %60 : vector<8x8xf32>
    %cst_23 = arith.constant dense<0.000000e+00> : vector<8xf32>
    %62 = vector.multi_reduction <add>, %61, %cst_23 [1] : vector<8x8xf32> to vector<8xf32>
    %63 = vector.shape_cast %62 : vector<8xf32> to vector<8x1xf32>
    %64 = tpu.reciprocal %63 {approx = true} : vector<8x1xf32> -> vector<8x1xf32>
    %65 = vector.broadcast %64 : vector<8x1xf32> to vector<8x8xf32>
    %66 = arith.mulf %61, %65 : vector<8x8xf32>
    %67 = arith.truncf %66 : vector<8x8xf32> to vector<8x8xbf16>
    %cst_24 = arith.constant dense<0.000000e+00> : vector<8x8xf32>
    %68 = tpu.matmul %67, %53, %cst_24 {dimension_numbers = #tpu.dot_dimension_numbers<[1], [0], [0], [1], [0, 0, 1, 1], [], []>} : vector<8x8xbf16>, vector<8x8xbf16>, vector<8x8xf32> -> vector<8x8xf32>
    %69 = arith.truncf %68 : vector<8x8xf32> to vector<8x8xbf16>
    %cst_25 = arith.constant dense<0.000000e+00> : vector<8x32xf32>
    %70 = tpu.matmul %69, %45, %cst_25 {dimension_numbers = #tpu.dot_dimension_numbers<[1], [0], [0], [1], [0, 0, 1, 1], [], []>} : vector<8x8xbf16>, vector<8x32xbf16>, vector<8x32xf32> -> vector<8x32xf32>
    %71 = arith.addf %43, %70 : vector<8x32xf32>
    %72 = vector.extract_strided_slice %16 {offsets = [2, 0, 0], sizes = [1, 8, 32], strides = [1, 1, 1]} : vector<4x8x32xbf16> to vector<1x8x32xbf16>
    %73 = vector.shape_cast %72 : vector<1x8x32xbf16> to vector<8x32xbf16>
    %74 = vector.extract_strided_slice %11 {offsets = [0, 16], sizes = [8, 8], strides = [1, 1]} : vector<8x96xf32> to vector<8x8xf32>
    %cst_26 = arith.constant 0.353553385 : f32
    %75 = vector.broadcast %cst_26 : f32 to vector<8x8xf32>
    %76 = arith.mulf %74, %75 : vector<8x8xf32>
    %77 = arith.truncf %76 : vector<8x8xf32> to vector<8x8xbf16>
    %78 = vector.extract_strided_slice %11 {offsets = [0, 48], sizes = [8, 8], strides = [1, 1]} : vector<8x96xf32> to vector<8x8xf32>
    %79 = arith.truncf %78 : vector<8x8xf32> to vector<8x8xbf16>
    %80 = vector.extract_strided_slice %11 {offsets = [0, 80], sizes = [8, 8], strides = [1, 1]} : vector<8x96xf32> to vector<8x8xf32>
    %81 = arith.truncf %80 : vector<8x8xf32> to vector<8x8xbf16>
    %cst_27 = arith.constant dense<0.000000e+00> : vector<8x8xf32>
    %82 = tpu.matmul %77, %79, %cst_27 {dimension_numbers = #tpu.dot_dimension_numbers<[1], [1], [0], [0], [0, 0, 1, 0], [], []>} : vector<8x8xbf16>, vector<8x8xbf16>, vector<8x8xf32> -> vector<8x8xf32>
    %cst_28 = arith.constant -1.000000e+30 : f32
    %83 = vector.broadcast %cst_28 : f32 to vector<8x8xf32>
    %84 = arith.select %14, %82, %83 : vector<8x8xi1>, vector<8x8xf32>
    %cst_29 = arith.constant dense<0xFF800000> : vector<8xf32>
    %85 = vector.multi_reduction <maximumf>, %84, %cst_29 [1] : vector<8x8xf32> to vector<8xf32>
    %86 = vector.shape_cast %85 : vector<8xf32> to vector<8x1xf32>
    %87 = vector.broadcast %86 : vector<8x1xf32> to vector<8x8xf32>
    %88 = arith.subf %84, %87 : vector<8x8xf32>
    %89 = math.exp %88 : vector<8x8xf32>
    %cst_30 = arith.constant dense<0.000000e+00> : vector<8xf32>
    %90 = vector.multi_reduction <add>, %89, %cst_30 [1] : vector<8x8xf32> to vector<8xf32>
    %91 = vector.shape_cast %90 : vector<8xf32> to vector<8x1xf32>
    %92 = tpu.reciprocal %91 {approx = true} : vector<8x1xf32> -> vector<8x1xf32>
    %93 = vector.broadcast %92 : vector<8x1xf32> to vector<8x8xf32>
    %94 = arith.mulf %89, %93 : vector<8x8xf32>
    %95 = arith.truncf %94 : vector<8x8xf32> to vector<8x8xbf16>
    %cst_31 = arith.constant dense<0.000000e+00> : vector<8x8xf32>
    %96 = tpu.matmul %95, %81, %cst_31 {dimension_numbers = #tpu.dot_dimension_numbers<[1], [0], [0], [1], [0, 0, 1, 1], [], []>} : vector<8x8xbf16>, vector<8x8xbf16>, vector<8x8xf32> -> vector<8x8xf32>
    %97 = arith.truncf %96 : vector<8x8xf32> to vector<8x8xbf16>
    %cst_32 = arith.constant dense<0.000000e+00> : vector<8x32xf32>
    %98 = tpu.matmul %97, %73, %cst_32 {dimension_numbers = #tpu.dot_dimension_numbers<[1], [0], [0], [1], [0, 0, 1, 1], [], []>} : vector<8x8xbf16>, vector<8x32xbf16>, vector<8x32xf32> -> vector<8x32xf32>
    %99 = arith.addf %71, %98 : vector<8x32xf32>
    %100 = vector.extract_strided_slice %16 {offsets = [3, 0, 0], sizes = [1, 8, 32], strides = [1, 1, 1]} : vector<4x8x32xbf16> to vector<1x8x32xbf16>
    %101 = vector.shape_cast %100 : vector<1x8x32xbf16> to vector<8x32xbf16>
    %102 = vector.extract_strided_slice %11 {offsets = [0, 24], sizes = [8, 8], strides = [1, 1]} : vector<8x96xf32> to vector<8x8xf32>
    %cst_33 = arith.constant 0.353553385 : f32
    %103 = vector.broadcast %cst_33 : f32 to vector<8x8xf32>
    %104 = arith.mulf %102, %103 : vector<8x8xf32>
    %105 = arith.truncf %104 : vector<8x8xf32> to vector<8x8xbf16>
    %106 = vector.extract_strided_slice %11 {offsets = [0, 56], sizes = [8, 8], strides = [1, 1]} : vector<8x96xf32> to vector<8x8xf32>
    %107 = arith.truncf %106 : vector<8x8xf32> to vector<8x8xbf16>
    %108 = vector.extract_strided_slice %11 {offsets = [0, 88], sizes = [8, 8], strides = [1, 1]} : vector<8x96xf32> to vector<8x8xf32>
    %109 = arith.truncf %108 : vector<8x8xf32> to vector<8x8xbf16>
    %cst_34 = arith.constant dense<0.000000e+00> : vector<8x8xf32>
    %110 = tpu.matmul %105, %107, %cst_34 {dimension_numbers = #tpu.dot_dimension_numbers<[1], [1], [0], [0], [0, 0, 1, 0], [], []>} : vector<8x8xbf16>, vector<8x8xbf16>, vector<8x8xf32> -> vector<8x8xf32>
    %cst_35 = arith.constant -1.000000e+30 : f32
    %111 = vector.broadcast %cst_35 : f32 to vector<8x8xf32>
    %112 = arith.select %14, %110, %111 : vector<8x8xi1>, vector<8x8xf32>
    %cst_36 = arith.constant dense<0xFF800000> : vector<8xf32>
    %113 = vector.multi_reduction <maximumf>, %112, %cst_36 [1] : vector<8x8xf32> to vector<8xf32>
    %114 = vector.shape_cast %113 : vector<8xf32> to vector<8x1xf32>
    %115 = vector.broadcast %114 : vector<8x1xf32> to vector<8x8xf32>
    %116 = arith.subf %112, %115 : vector<8x8xf32>
    %117 = math.exp %116 : vector<8x8xf32>
    %cst_37 = arith.constant dense<0.000000e+00> : vector<8xf32>
    %118 = vector.multi_reduction <add>, %117, %cst_37 [1] : vector<8x8xf32> to vector<8xf32>
    %119 = vector.shape_cast %118 : vector<8xf32> to vector<8x1xf32>
    %120 = tpu.reciprocal %119 {approx = true} : vector<8x1xf32> -> vector<8x1xf32>
    %121 = vector.broadcast %120 : vector<8x1xf32> to vector<8x8xf32>
    %122 = arith.mulf %117, %121 : vector<8x8xf32>
    %123 = arith.truncf %122 : vector<8x8xf32> to vector<8x8xbf16>
    %cst_38 = arith.constant dense<0.000000e+00> : vector<8x8xf32>
    %124 = tpu.matmul %123, %109, %cst_38 {dimension_numbers = #tpu.dot_dimension_numbers<[1], [0], [0], [1], [0, 0, 1, 1], [], []>} : vector<8x8xbf16>, vector<8x8xbf16>, vector<8x8xf32> -> vector<8x8xf32>
    %125 = arith.truncf %124 : vector<8x8xf32> to vector<8x8xbf16>
    %cst_39 = arith.constant dense<0.000000e+00> : vector<8x32xf32>
    %126 = tpu.matmul %125, %101, %cst_39 {dimension_numbers = #tpu.dot_dimension_numbers<[1], [0], [0], [1], [0, 0, 1, 1], [], []>} : vector<8x8xbf16>, vector<8x32xbf16>, vector<8x32xf32> -> vector<8x32xf32>
    %127 = arith.addf %99, %126 : vector<8x32xf32>
    %c0_40 = arith.constant 0 : index
    %c0_41 = arith.constant 0 : index
    %c0_42 = arith.constant 0 : index
    %128 = vector.load %arg10[%c0_40, %c0_41, %c0_42] : memref<1x1x32xf32, #tpu.memory_space<vmem>>, vector<1x1x32xf32>
    %129 = vector.shape_cast %128 : vector<1x1x32xf32> to vector<1x32xf32>
    %130 = vector.broadcast %129 : vector<1x32xf32> to vector<8x32xf32>
    %131 = arith.addf %127, %130 : vector<8x32xf32>
    %132 = arith.addf %3, %131 : vector<8x32xf32>
    %c0_43 = arith.constant 0 : index
    %c0_44 = arith.constant 0 : index
    %c0_45 = arith.constant 0 : index
    %133 = vector.load %arg13[%c0_43, %c0_44, %c0_45] : memref<1x1x32xf32, #tpu.memory_space<vmem>>, vector<1x1x32xf32>
    %134 = vector.shape_cast %133 : vector<1x1x32xf32> to vector<1x32xf32>
    %c0_46 = arith.constant 0 : index
    %c0_47 = arith.constant 0 : index
    %c0_48 = arith.constant 0 : index
    %135 = vector.load %arg14[%c0_46, %c0_47, %c0_48] : memref<1x1x32xf32, #tpu.memory_space<vmem>>, vector<1x1x32xf32>
    %136 = vector.shape_cast %135 : vector<1x1x32xf32> to vector<1x32xf32>
    %cst_49 = arith.constant dense<0.000000e+00> : vector<8xf32>
    %137 = vector.multi_reduction <add>, %132, %cst_49 [1] : vector<8x32xf32> to vector<8xf32>
    %138 = vector.shape_cast %137 : vector<8xf32> to vector<8x1xf32>
    %cst_50 = arith.constant 3.200000e+01 : f32
    %139 = vector.broadcast %cst_50 : f32 to vector<8x1xf32>
    %140 = arith.divf %138, %139 : vector<8x1xf32>
    %141 = vector.broadcast %140 : vector<8x1xf32> to vector<8x32xf32>
    %142 = arith.subf %132, %141 : vector<8x32xf32>
    %143 = arith.mulf %142, %142 : vector<8x32xf32>
    %cst_51 = arith.constant dense<0.000000e+00> : vector<8xf32>
    %144 = vector.multi_reduction <add>, %143, %cst_51 [1] : vector<8x32xf32> to vector<8xf32>
    %145 = vector.shape_cast %144 : vector<8xf32> to vector<8x1xf32>
    %cst_52 = arith.constant 3.200000e+01 : f32
    %146 = vector.broadcast %cst_52 : f32 to vector<8x1xf32>
    %147 = arith.divf %145, %146 : vector<8x1xf32>
    %cst_53 = arith.constant 9.99999974E-6 : f32
    %148 = vector.broadcast %cst_53 : f32 to vector<8x1xf32>
    %149 = arith.addf %147, %148 : vector<8x1xf32>
    %150 = math.rsqrt %149 : vector<8x1xf32>
    %151 = vector.broadcast %150 : vector<8x1xf32> to vector<8x32xf32>
    %152 = arith.mulf %142, %151 : vector<8x32xf32>
    %153 = vector.broadcast %134 : vector<1x32xf32> to vector<8x32xf32>
    %154 = arith.mulf %152, %153 : vector<8x32xf32>
    %155 = vector.broadcast %136 : vector<1x32xf32> to vector<8x32xf32>
    %156 = arith.addf %154, %155 : vector<8x32xf32>
    %c0_54 = arith.constant 0 : index
    %c0_55 = arith.constant 0 : index
    %157 = vector.load %arg27[%c0_54, %c0_55] : memref<1x32xf32, #tpu.memory_space<vmem>>, vector<1x32xf32>
    %158 = arith.truncf %157 : vector<1x32xf32> to vector<1x32xbf16>
    %c0_56 = arith.constant 0 : index
    %c0_57 = arith.constant 0 : index
    %c0_58 = arith.constant 0 : index
    %159 = vector.load %arg11[%c0_56, %c0_57, %c0_58] : memref<1x32x32xbf16, #tpu.memory_space<vmem>>, vector<1x32x32xbf16>
    %160 = vector.shape_cast %159 : vector<1x32x32xbf16> to vector<32x32xbf16>
    %cst_59 = arith.constant dense<0.000000e+00> : vector<1x32xf32>
    %161 = tpu.matmul %158, %160, %cst_59 {dimension_numbers = #tpu.dot_dimension_numbers<[1], [0], [0], [1], [0, 0, 1, 1], [], []>} : vector<1x32xbf16>, vector<32x32xbf16>, vector<1x32xf32> -> vector<1x32xf32>
    %c0_60 = arith.constant 0 : index
    %c0_61 = arith.constant 0 : index
    %c0_62 = arith.constant 0 : index
    %162 = vector.load %arg12[%c0_60, %c0_61, %c0_62] : memref<1x1x32xf32, #tpu.memory_space<vmem>>, vector<1x1x32xf32>
    %163 = vector.shape_cast %162 : vector<1x1x32xf32> to vector<1x32xf32>
    %164 = arith.addf %161, %163 : vector<1x32xf32>
    %165 = vector.broadcast %164 : vector<1x32xf32> to vector<8x32xf32>
    %166 = arith.addf %156, %165 : vector<8x32xf32>
    %c0_63 = arith.constant 0 : index
    %c0_64 = arith.constant 0 : index
    %c0_65 = arith.constant 0 : index
    %167 = vector.load %arg15[%c0_63, %c0_64, %c0_65] : memref<1x1x32xf32, #tpu.memory_space<vmem>>, vector<1x1x32xf32>
    %168 = vector.shape_cast %167 : vector<1x1x32xf32> to vector<1x32xf32>
    %c0_66 = arith.constant 0 : index
    %c0_67 = arith.constant 0 : index
    %c0_68 = arith.constant 0 : index
    %169 = vector.load %arg16[%c0_66, %c0_67, %c0_68] : memref<1x1x32xf32, #tpu.memory_space<vmem>>, vector<1x1x32xf32>
    %170 = vector.shape_cast %169 : vector<1x1x32xf32> to vector<1x32xf32>
    %cst_69 = arith.constant dense<0.000000e+00> : vector<8xf32>
    %171 = vector.multi_reduction <add>, %166, %cst_69 [1] : vector<8x32xf32> to vector<8xf32>
    %172 = vector.shape_cast %171 : vector<8xf32> to vector<8x1xf32>
    %cst_70 = arith.constant 3.200000e+01 : f32
    %173 = vector.broadcast %cst_70 : f32 to vector<8x1xf32>
    %174 = arith.divf %172, %173 : vector<8x1xf32>
    %175 = vector.broadcast %174 : vector<8x1xf32> to vector<8x32xf32>
    %176 = arith.subf %166, %175 : vector<8x32xf32>
    %177 = arith.mulf %176, %176 : vector<8x32xf32>
    %cst_71 = arith.constant dense<0.000000e+00> : vector<8xf32>
    %178 = vector.multi_reduction <add>, %177, %cst_71 [1] : vector<8x32xf32> to vector<8xf32>
    %179 = vector.shape_cast %178 : vector<8xf32> to vector<8x1xf32>
    %cst_72 = arith.constant 3.200000e+01 : f32
    %180 = vector.broadcast %cst_72 : f32 to vector<8x1xf32>
    %181 = arith.divf %179, %180 : vector<8x1xf32>
    %cst_73 = arith.constant 9.99999974E-6 : f32
    %182 = vector.broadcast %cst_73 : f32 to vector<8x1xf32>
    %183 = arith.addf %181, %182 : vector<8x1xf32>
    %184 = math.rsqrt %183 : vector<8x1xf32>
    %185 = vector.broadcast %184 : vector<8x1xf32> to vector<8x32xf32>
    %186 = arith.mulf %176, %185 : vector<8x32xf32>
    %187 = vector.broadcast %168 : vector<1x32xf32> to vector<8x32xf32>
    %188 = arith.mulf %186, %187 : vector<8x32xf32>
    %189 = vector.broadcast %170 : vector<1x32xf32> to vector<8x32xf32>
    %190 = arith.addf %188, %189 : vector<8x32xf32>
    %191 = arith.truncf %190 : vector<8x32xf32> to vector<8x32xbf16>
    %c0_74 = arith.constant 0 : index
    %c0_75 = arith.constant 0 : index
    %c0_76 = arith.constant 0 : index
    %192 = vector.load %arg17[%c0_74, %c0_75, %c0_76] : memref<1x32x2048xbf16, #tpu.memory_space<vmem>>, vector<1x32x2048xbf16>
    %193 = vector.shape_cast %192 : vector<1x32x2048xbf16> to vector<32x2048xbf16>
    %cst_77 = arith.constant dense<0.000000e+00> : vector<8x2048xf32>
    %194 = tpu.matmul %191, %193, %cst_77 {dimension_numbers = #tpu.dot_dimension_numbers<[1], [0], [0], [1], [0, 0, 1, 1], [], []>} : vector<8x32xbf16>, vector<32x2048xbf16>, vector<8x2048xf32> -> vector<8x2048xf32>
    %c0_78 = arith.constant 0 : index
    %c0_79 = arith.constant 0 : index
    %c0_80 = arith.constant 0 : index
    %195 = vector.load %arg18[%c0_78, %c0_79, %c0_80] : memref<1x1x2048xf32, #tpu.memory_space<vmem>>, vector<1x1x2048xf32>
    %196 = vector.shape_cast %195 : vector<1x1x2048xf32> to vector<1x2048xf32>
    %197 = vector.broadcast %196 : vector<1x2048xf32> to vector<8x2048xf32>
    %198 = arith.addf %194, %197 : vector<8x2048xf32>
    %cst_81 = arith.constant 0.000000e+00 : f32
    %199 = vector.broadcast %cst_81 : f32 to vector<8x2048xf32>
    %200 = arith.maximumf %198, %199 : vector<8x2048xf32>
    %201 = arith.truncf %200 : vector<8x2048xf32> to vector<8x2048xbf16>
    %c0_82 = arith.constant 0 : index
    %c0_83 = arith.constant 0 : index
    %c0_84 = arith.constant 0 : index
    %202 = vector.load %arg19[%c0_82, %c0_83, %c0_84] : memref<1x2048x32xbf16, #tpu.memory_space<vmem>>, vector<1x2048x32xbf16>
    %203 = vector.shape_cast %202 : vector<1x2048x32xbf16> to vector<2048x32xbf16>
    %cst_85 = arith.constant dense<0.000000e+00> : vector<8x32xf32>
    %204 = tpu.matmul %201, %203, %cst_85 {dimension_numbers = #tpu.dot_dimension_numbers<[1], [0], [0], [1], [0, 0, 1, 1], [], []>} : vector<8x2048xbf16>, vector<2048x32xbf16>, vector<8x32xf32> -> vector<8x32xf32>
    %c0_86 = arith.constant 0 : index
    %c0_87 = arith.constant 0 : index
    %c0_88 = arith.constant 0 : index
    %205 = vector.load %arg20[%c0_86, %c0_87, %c0_88] : memref<1x1x32xf32, #tpu.memory_space<vmem>>, vector<1x1x32xf32>
    %206 = vector.shape_cast %205 : vector<1x1x32xf32> to vector<1x32xf32>
    %207 = vector.broadcast %206 : vector<1x32xf32> to vector<8x32xf32>
    %208 = arith.addf %204, %207 : vector<8x32xf32>
    %209 = arith.addf %190, %208 : vector<8x32xf32>
    %c0_89 = arith.constant 0 : index
    %c0_90 = arith.constant 0 : index
    %c0_91 = arith.constant 0 : index
    %210 = vector.load %arg21[%c0_89, %c0_90, %c0_91] : memref<1x1x32xf32, #tpu.memory_space<vmem>>, vector<1x1x32xf32>
    %211 = vector.shape_cast %210 : vector<1x1x32xf32> to vector<1x32xf32>
    %c0_92 = arith.constant 0 : index
    %c0_93 = arith.constant 0 : index
    %c0_94 = arith.constant 0 : index
    %212 = vector.load %arg22[%c0_92, %c0_93, %c0_94] : memref<1x1x32xf32, #tpu.memory_space<vmem>>, vector<1x1x32xf32>
    %213 = vector.shape_cast %212 : vector<1x1x32xf32> to vector<1x32xf32>
    %cst_95 = arith.constant dense<0.000000e+00> : vector<8xf32>
    %214 = vector.multi_reduction <add>, %209, %cst_95 [1] : vector<8x32xf32> to vector<8xf32>
    %215 = vector.shape_cast %214 : vector<8xf32> to vector<8x1xf32>
    %cst_96 = arith.constant 3.200000e+01 : f32
    %216 = vector.broadcast %cst_96 : f32 to vector<8x1xf32>
    %217 = arith.divf %215, %216 : vector<8x1xf32>
    %218 = vector.broadcast %217 : vector<8x1xf32> to vector<8x32xf32>
    %219 = arith.subf %209, %218 : vector<8x32xf32>
    %220 = arith.mulf %219, %219 : vector<8x32xf32>
    %cst_97 = arith.constant dense<0.000000e+00> : vector<8xf32>
    %221 = vector.multi_reduction <add>, %220, %cst_97 [1] : vector<8x32xf32> to vector<8xf32>
    %222 = vector.shape_cast %221 : vector<8xf32> to vector<8x1xf32>
    %cst_98 = arith.constant 3.200000e+01 : f32
    %223 = vector.broadcast %cst_98 : f32 to vector<8x1xf32>
    %224 = arith.divf %222, %223 : vector<8x1xf32>
    %cst_99 = arith.constant 9.99999974E-6 : f32
    %225 = vector.broadcast %cst_99 : f32 to vector<8x1xf32>
    %226 = arith.addf %224, %225 : vector<8x1xf32>
    %227 = math.rsqrt %226 : vector<8x1xf32>
    %228 = vector.broadcast %227 : vector<8x1xf32> to vector<8x32xf32>
    %229 = arith.mulf %219, %228 : vector<8x32xf32>
    %230 = vector.broadcast %211 : vector<1x32xf32> to vector<8x32xf32>
    %231 = arith.mulf %229, %230 : vector<8x32xf32>
    %232 = vector.broadcast %213 : vector<1x32xf32> to vector<8x32xf32>
    %233 = arith.addf %231, %232 : vector<8x32xf32>
    %c0_100 = arith.constant 0 : index
    %c0_101 = arith.constant 0 : index
    %234 = vector.load %arg26[%c0_100, %c0_101] : memref<8x32xf32, #tpu.memory_space<vmem>>, vector<8x32xf32>
    tpu.vector_store %arg26[%c0_100, %c0_101], %233 {strides = array<i32>} : memref<8x32xf32, #tpu.memory_space<vmem>>, vector<8x32xf32>,
    %c1_i32 = arith.constant 1 : i32
    %235 = arith.cmpi eq, %arg1, %c1_i32 : i32
    %236 = arith.extui %235 : i1 to i32
    %c0_i32_102 = arith.constant 0 : i32
    %237 = arith.cmpi ne, %236, %c0_i32_102 : i32
    scf.if %237 {
      %238 = arith.truncf %233 : vector<8x32xf32> to vector<8x32xbf16>
      %c0_103 = arith.constant 0 : index
      %c0_104 = arith.constant 0 : index
      %239 = vector.load %arg23[%c0_103, %c0_104] : memref<32x128xbf16, #tpu.memory_space<vmem>>, vector<32x128xbf16>
      %cst_105 = arith.constant dense<0.000000e+00> : vector<8x128xf32>
      %240 = tpu.matmul %238, %239, %cst_105 {dimension_numbers = #tpu.dot_dimension_numbers<[1], [0], [0], [1], [0, 0, 1, 1], [], []>} : vector<8x32xbf16>, vector<32x128xbf16>, vector<8x128xf32> -> vector<8x128xf32>
      %c0_106 = arith.constant 0 : index
      %c0_107 = arith.constant 0 : index
      %241 = vector.load %arg24[%c0_106, %c0_107] : memref<1x128xf32, #tpu.memory_space<vmem>>, vector<1x128xf32>
      %242 = vector.broadcast %241 : vector<1x128xf32> to vector<8x128xf32>
      %243 = arith.addf %240, %242 : vector<8x128xf32>
      %c0_108 = arith.constant 0 : index
      %c0_109 = arith.constant 0 : index
      %244 = vector.load %arg25[%c0_108, %c0_109] : memref<8x128xf32, #tpu.memory_space<vmem>>, vector<8x128xf32>
      tpu.vector_store %arg25[%c0_108, %c0_109], %243 {strides = array<i32>} : memref<8x128xf32, #tpu.memory_space<vmem>>, vector<8x128xf32>,
    } else {
    }
    return
  }
  func.func @transform_0(%arg0: i32, %arg1: i32) -> (i32, i32) {
    %c0_i32 = arith.constant 0 : i32
    %c0_i32_0 = arith.constant 0 : i32
    return %arg0, %c0_i32 : i32, i32
  }
  func.func @transform_1(%arg0: i32, %arg1: i32) -> (i32, i32) {
    %c0_i32 = arith.constant 0 : i32
    %c0_i32_0 = arith.constant 0 : i32
    %c0_i32_1 = arith.constant 0 : i32
    return %c0_i32, %c0_i32_0 : i32, i32
  }
  func.func @transform_2(%arg0: i32, %arg1: i32) -> (i32, i32) {
    %c0_i32 = arith.constant 0 : i32
    %c0_i32_0 = arith.constant 0 : i32
    %c0_i32_1 = arith.constant 0 : i32
    return %c0_i32, %c0_i32_0 : i32, i32
  }
  func.func @transform_3(%arg0: i32, %arg1: i32) -> (i32, i32) {
    %c0_i32 = arith.constant 0 : i32
    %c0_i32_0 = arith.constant 0 : i32
    %c0_i32_1 = arith.constant 0 : i32
    return %c0_i32, %c0_i32_0 : i32, i32
  }
  func.func @transform_4(%arg0: i32, %arg1: i32) -> (i32, i32) {
    %c0_i32 = arith.constant 0 : i32
    %c0_i32_0 = arith.constant 0 : i32
    %c0_i32_1 = arith.constant 0 : i32
    return %c0_i32, %c0_i32_0 : i32, i32
  }
  func.func @transform_5(%arg0: i32, %arg1: i32) -> (i32, i32, i32) {
    %c0_i32 = arith.constant 0 : i32
    %c0_i32_0 = arith.constant 0 : i32
    %c0_i32_1 = arith.constant 0 : i32
    return %arg1, %c0_i32, %c0_i32_0 : i32, i32, i32
  }
  func.func @transform_6(%arg0: i32, %arg1: i32) -> (i32, i32, i32) {
    %c0_i32 = arith.constant 0 : i32
    %c0_i32_0 = arith.constant 0 : i32
    %c0_i32_1 = arith.constant 0 : i32
    return %arg1, %c0_i32, %c0_i32_0 : i32, i32, i32
  }
  func.func @transform_7(%arg0: i32, %arg1: i32) -> (i32, i32, i32, i32) {
    %c0_i32 = arith.constant 0 : i32
    %c0_i32_0 = arith.constant 0 : i32
    %c0_i32_1 = arith.constant 0 : i32
    %c0_i32_2 = arith.constant 0 : i32
    return %arg1, %c0_i32, %c0_i32_0, %c0_i32_1 : i32, i32, i32, i32
  }
  func.func @transform_8(%arg0: i32, %arg1: i32) -> (i32, i32, i32) {
    %c0_i32 = arith.constant 0 : i32
    %c0_i32_0 = arith.constant 0 : i32
    %c0_i32_1 = arith.constant 0 : i32
    return %arg1, %c0_i32, %c0_i32_0 : i32, i32, i32
  }
  func.func @transform_9(%arg0: i32, %arg1: i32) -> (i32, i32, i32) {
    %c0_i32 = arith.constant 0 : i32
    %c0_i32_0 = arith.constant 0 : i32
    %c0_i32_1 = arith.constant 0 : i32
    return %arg1, %c0_i32, %c0_i32_0 : i32, i32, i32
  }
  func.func @transform_10(%arg0: i32, %arg1: i32) -> (i32, i32, i32) {
    %c0_i32 = arith.constant 0 : i32
    %c0_i32_0 = arith.constant 0 : i32
    %c0_i32_1 = arith.constant 0 : i32
    return %arg1, %c0_i32, %c0_i32_0 : i32, i32, i32
  }
  func.func @transform_11(%arg0: i32, %arg1: i32) -> (i32, i32, i32) {
    %c0_i32 = arith.constant 0 : i32
    %c0_i32_0 = arith.constant 0 : i32
    %c0_i32_1 = arith.constant 0 : i32
    return %arg1, %c0_i32, %c0_i32_0 : i32, i32, i32
  }
  func.func @transform_12(%arg0: i32, %arg1: i32) -> (i32, i32, i32) {
    %c0_i32 = arith.constant 0 : i32
    %c0_i32_0 = arith.constant 0 : i32
    %c0_i32_1 = arith.constant 0 : i32
    return %arg1, %c0_i32, %c0_i32_0 : i32, i32, i32
  }
  func.func @transform_13(%arg0: i32, %arg1: i32) -> (i32, i32, i32) {
    %c0_i32 = arith.constant 0 : i32
    %c0_i32_0 = arith.constant 0 : i32
    %c0_i32_1 = arith.constant 0 : i32
    return %arg1, %c0_i32, %c0_i32_0 : i32, i32, i32
  }
  func.func @transform_14(%arg0: i32, %arg1: i32) -> (i32, i32, i32) {
    %c0_i32 = arith.constant 0 : i32
    %c0_i32_0 = arith.constant 0 : i32
    %c0_i32_1 = arith.constant 0 : i32
    return %arg1, %c0_i32, %c0_i32_0 : i32, i32, i32
  }
  func.func @transform_15(%arg0: i32, %arg1: i32) -> (i32, i32, i32) {
    %c0_i32 = arith.constant 0 : i32
    %c0_i32_0 = arith.constant 0 : i32
    %c0_i32_1 = arith.constant 0 : i32
    return %arg1, %c0_i32, %c0_i32_0 : i32, i32, i32
  }
  func.func @transform_16(%arg0: i32, %arg1: i32) -> (i32, i32, i32) {
    %c0_i32 = arith.constant 0 : i32
    %c0_i32_0 = arith.constant 0 : i32
    %c0_i32_1 = arith.constant 0 : i32
    return %arg1, %c0_i32, %c0_i32_0 : i32, i32, i32
  }
  func.func @transform_17(%arg0: i32, %arg1: i32) -> (i32, i32, i32) {
    %c0_i32 = arith.constant 0 : i32
    %c0_i32_0 = arith.constant 0 : i32
    %c0_i32_1 = arith.constant 0 : i32
    return %arg1, %c0_i32, %c0_i32_0 : i32, i32, i32
  }
  func.func @transform_18(%arg0: i32, %arg1: i32) -> (i32, i32, i32) {
    %c0_i32 = arith.constant 0 : i32
    %c0_i32_0 = arith.constant 0 : i32
    %c0_i32_1 = arith.constant 0 : i32
    return %arg1, %c0_i32, %c0_i32_0 : i32, i32, i32
  }
  func.func @transform_19(%arg0: i32, %arg1: i32) -> (i32, i32, i32) {
    %c0_i32 = arith.constant 0 : i32
    %c0_i32_0 = arith.constant 0 : i32
    %c0_i32_1 = arith.constant 0 : i32
    return %arg1, %c0_i32, %c0_i32_0 : i32, i32, i32
  }
  func.func @transform_20(%arg0: i32, %arg1: i32) -> (i32, i32, i32) {
    %c0_i32 = arith.constant 0 : i32
    %c0_i32_0 = arith.constant 0 : i32
    %c0_i32_1 = arith.constant 0 : i32
    return %arg1, %c0_i32, %c0_i32_0 : i32, i32, i32
  }
  func.func @transform_21(%arg0: i32, %arg1: i32) -> (i32, i32) {
    %c0_i32 = arith.constant 0 : i32
    %c0_i32_0 = arith.constant 0 : i32
    %c0_i32_1 = arith.constant 0 : i32
    return %c0_i32, %c0_i32_0 : i32, i32
  }
  func.func @transform_22(%arg0: i32, %arg1: i32) -> (i32, i32) {
    %c0_i32 = arith.constant 0 : i32
    %c0_i32_0 = arith.constant 0 : i32
    %c0_i32_1 = arith.constant 0 : i32
    return %c0_i32, %c0_i32_0 : i32, i32
  }
  func.func @transform_23(%arg0: i32, %arg1: i32) -> (i32, i32) {
    %c0_i32 = arith.constant 0 : i32
    %c0_i32_0 = arith.constant 0 : i32
    return %arg0, %c0_i32 : i32, i32
  }
}

</mosaic_0001>

<bundles_post_ra>
// kernel: captioning_transformer_forward.1
= control target key start
LH: loop header
LB: loop body
LE: loop exit
PB: predicated region body
PF: predicated region fallthrough
CT: control target
= control target key end

     0   :  { %s5191_s30 = smov 0   ;;  %s5193_s24 = smov 0   ;;  %s5818_s0 = inlined_call_operand.vmem [shape: f32[16,32], index: 0, kind: input, shape index: {}]   ;;  %s5819_s1 = inlined_call_operand.vmem [shape: f32[8,32], index: 1, kind: input, shape index: {}]   ;;  %s5820_s2 = inlined_call_operand.vmem [shape: f32[2,64], index: 2, kind: input, shape index: {}]   ;;  %s5821_s3 = inlined_call_operand.vmem [shape: bf16[64,32], index: 3, kind: input, shape index: {}]   ;;  %s5822_s4 = inlined_call_operand.vmem [shape: f32[1,32], index: 4, kind: input, shape index: {}]   ;;  %s5823_s5 = inlined_call_operand.vmem [shape: bf16[2,32,96], index: 5, kind: input, shape index: {}]   ;;  %s5824_s6 = inlined_call_operand.vmem [shape: f32[2,1,96], index: 6, kind: input, shape index: {}]   ;;  %s5825_s7 = inlined_call_operand.vmem [shape: bf16[2,4,8,32], index: 7, kind: input, shape index: {}]   ;;  %s5826_s8 = inlined_call_operand.vmem [shape: f32[2,1,32], index: 8, kind: input, shape index: {}]   ;;  %s5827_s9 = inlined_call_operand.vmem [shape: bf16[2,32,32], index: 9, kind: input, shape index: {}]   ;;  %s5828_s10 = inlined_call_operand.vmem [shape: f32[2,1,32], index: 10, kind: input, shape index: {}]   ;;  %s5829_s11 = inlined_call_operand.vmem [shape: f32[2,1,32], index: 11, kind: input, shape index: {}]   ;;  %s5830_s12 = inlined_call_operand.vmem [shape: f32[2,1,32], index: 12, kind: input, shape index: {}]   ;;  %s5831_s13 = inlined_call_operand.vmem [shape: f32[2,1,32], index: 13, kind: input, shape index: {}]   ;;  %s5832_s14 = inlined_call_operand.vmem [shape: f32[2,1,32], index: 14, kind: input, shape index: {}]   ;;  %s5833_s15 = inlined_call_operand.vmem [shape: bf16[2,32,2048], index: 15, kind: input, shape index: {}]   ;;  %s5834_s16 = inlined_call_operand.vmem [shape: f32[2,1,2048], index: 16, kind: input, shape index: {}]   ;;  %s5835_s17 = inlined_call_operand.vmem [shape: bf16[2,2048,32], index: 17, kind: input, shape index: {}]   ;;  %s5836_s18 = inlined_call_operand.vmem [shape: f32[2,1,32], index: 18, kind: input, shape index: {}]   ;;  %s5837_s19 = inlined_call_operand.vmem [shape: f32[2,1,32], index: 19, kind: input, shape index: {}]   ;;  %s5838_s20 = inlined_call_operand.vmem [shape: f32[2,1,32], index: 20, kind: input, shape index: {}]   ;;  %s5839_s21 = inlined_call_operand.vmem [shape: bf16[32,128], index: 21, kind: input, shape index: {}]   ;;  %s5840_s22 = inlined_call_operand.vmem [shape: f32[1,128], index: 22, kind: input, shape index: {}]   ;;  %s5841_s23 = inlined_call_operand.vmem [shape: f32[16,128], index: 23, kind: output, shape index: {}]  }
   0x1   :  { %5852 = sst [smem:[#allocation14_spill]] %s5818_s0  ;;  %s5195_s25 = smov 0  }
   0x2   :  { %5853 = sst [smem:[#allocation15_spill]] %s5819_s1 }
   0x3   :  { %5854 = sst [smem:[#allocation16_spill]] %s5820_s2 }
   0x4   :  { %5855 = sst [smem:[#allocation17_spill]] %s5821_s3 }
   0x5   :  { %5856 = sst [smem:[#allocation18_spill]] %s5822_s4  ;;  %s5189_s4 = smov 0  }
   0x6   :  { %5857 = sst [smem:[#allocation19_spill]] %s5823_s5  ;;  %s5197_s5 = smov 0  }
   0x7   :  { %5858 = sst [smem:[#allocation20_spill]] %s5824_s6 }
   0x8   :  { %5859 = sst [smem:[#allocation21_spill]] %s5825_s7 }
   0x9   :  { %5860 = sst [smem:[#allocation22_spill]] %s5826_s8 }
   0xa   :  { %5861 = sst [smem:[#allocation23_spill]] %s5827_s9 }
   0xb   :  { %5862 = sst [smem:[#allocation24_spill]] %s5833_s15 }
   0xc   :  { %5863 = sst [smem:[#allocation25_spill]] %s5834_s16 }
   0xd   :  { %5864 = sst [smem:[#allocation26_spill]] %s5837_s19 }
   0xe   :  { %5865 = sst [smem:[#allocation27_spill]] %s5838_s20 }
   0xf   :  { %5866 = sst [smem:[#allocation28_spill]] %s5839_s21 }
  0x10   :  { %5867 = sst [smem:[#allocation29_spill]] %s5840_s22 }
  0x11   :  { %5868 = sst [smem:[#allocation30_spill]] %s5841_s23 }
  0x12 LB: > { %5869 = sst [smem:[#allocation4_spill]] %s5033_s4  ;;  %s42_s1 = sadd.s32 1, %s5041_s24  ;;  %s5049_s5 = sphi %s5197_s5, %s33_s5   ;;  %s5045_s25 = sphi %s5195_s25, %s5917_s25   ;;  %s5041_s24 = sphi %s5193_s24, %s5916_s24   ;;  %s5037_s30 = sphi %s5191_s30, %s5915_s30   ;;  %s5033_s4 = sphi %s5189_s4, %s5914_s4  }
  0x13   : > { %5870 = sst [smem:[#allocation5_spill]] %s5037_s30  ;;  %s45_s26 = sadd.s32 1, %s5045_s25 }
  0x14   : > { %5871 = sst [smem:[#allocation6_spill]] %s5041_s24  ;;  %p43_p0 = scmp.ge.s32.totalorder %s42_s1, 2 }
  0x15   : > { %5872 = sst [smem:[#allocation7_spill]] %s5045_s25  ;;  %p4244_p1 = scmp.ge.s32.totalorder %s5049_s5, 1 }
  0x16   : > { %5873 = sst [smem:[#allocation8_spill]] %s5049_s5  ;;  %p787_p2 = scmp.lt.s32.totalorder %s5049_s5, 5 }
  0x17   : > { %s5919_s1 = smov (%p43_p0, %s42_s1), 0  ;;  %s5921_s26 = smov (!%p43_p0, %s45_s26), %s5045_s25 }
  0x18   : > { %5874 = sst [smem:[#allocation9_spill]] %s5919_s1  ;;  %p788_p3 = pnand %p4244_p1, %p787_p2 }
  0x19   : > { %p47_p4 = scmp.ge.s32.totalorder %s5921_s26, 2 }
  0x1a   : > { %791 = sbr.rel (%p788_p3) target bundleno = 4595 (0x11f3), region = 112 }
  0x1b   : > { %s5923_s26 = smov (%p47_p4, %s5921_s26), 0 }
  0x1c   : > { %5875 = sst [smem:[#allocation10_spill]] %s5923_s26 }
  0x21   : > { %p908_p5 = scmp.lt.s32.totalorder %s5037_s30, 1  ;;  %p912_p6 = scmp.lt.s32.totalorder %s5033_s4, 1 }
  0x22   : > { %s5876_s29 = sld [smem:[#allocation14_spill]]  ;;  %s5877_s25 = sld [smem:[#allocation19_spill]] }
  0x23   : > { %s909_s2 = scalar_select %p908_p5, %s5037_s30, 1 }
  0x24   : > { %s5227_s6 = scalar_select %p912_p6, %s5033_s4, 1 }
  0x25   : > { %s4245_s27 = sshll.u32 %s909_s2, 3  ;;  %s5880_s2 = sld [smem:[#allocation21_spill]] }
  0x26   : > { %s4466_s0 = sshll.u32 %s5227_s6, 4  ;;  %s5883_s9 = sld [smem:[#allocation23_spill]] }
  0x27   : > { %s5884_s16 = sld [smem:[#allocation25_spill]]  ;;  %s5886_s15 = sld [smem:[#allocation24_spill]] }
  0x28   : > { %s911_s3 = scalar_lea.vmem %s5876_s29, %s4245_s27  ;;  %s5236_s24 = scalar_lea.vmem %s5877_s25, %s4466_s0 }
  0x29   : > { %5878 = sst [smem:[#allocation11_spill]] %s5236_s24  ;;  %s4470_s4 = sshll.u32 %s5227_s6, 10 }
  0x2a   : > { %s964_s19 = scalar_lea.vmem %s5836_s18, %s5227_s6  ;;  %s5887_s8 = sld [smem:[#allocation26_spill]] }
  0x2b   : > { %s5245_s20 = scalar_lea.vmem %s5880_s2, %s4466_s0  ;;  %s5890_s30 = sld [smem:[#allocation4_spill]] }
  0x2c   : > { %5881 = sst [smem:[#allocation12_spill]] %s5245_s20  ;;  %s5254_s25 = scalar_lea.vmem %s5883_s9, %s4466_s0 }
  0x2d   : > { %s4469_s9 = sshll.u32 %s5227_s6, 8  ;;  %s5280_s26 = scalar_lea.vmem %s5884_s16, %s4466_s0 }
  0x2e   : > { %5885 = sst [smem:[#allocation13_spill]] %s5280_s26  ;;  %s5285_s23 = scalar_lea.vmem %s5886_s15, %s4469_s9 }
  0x2f   : > { %s5291_s20 = scalar_lea.vmem %s5835_s17, %s4470_s4  ;;  %s5888_s16 = sld [smem:[#allocation27_spill]] }
  0x30   : > { %s967_s0 = scalar_lea.vmem %s5887_s8, %s5227_s6  ;;  %s5889_s15 = sld [smem:[#allocation30_spill]] }
  0x31   : > { %p4258_p7 = scmp.ne.s32.totalorder %s5890_s30, 0 }
  0x32   : > { %v980_v0 = vld [vmem:[%s911_s3] sm:$0xff] (!%p4258_p7)  ;;  %s5891_s7 = sld [smem:[#allocation15_spill]] (!%p4258_p7)  ;;  %s5892_s29 = sld [smem:[#allocation5_spill]] (!%p4258_p7)  ;;  %vm983_vm0 = vcmask (!%p4258_p7), 261120   ;;  %v5051_v3 = vmov (!%p4258_p7), 0.0   ;;  %vm5052_vm1 = vmmov (!%p4258_p7), 0  }
  0x33   : > { %979 = sbr.rel (%p4258_p7) target bundleno = 288 (0x120), region = 116  ;;  %4685 = vmatprep.subr.bf16.mxu0 (!%p4258_p7), %v5051_v3  ;;  %s5893_s28 = sld [smem:[#allocation17_spill]] (!%p4258_p7)  ;;  %4693 = vmatprep.mubr.msk.bf16.mxu0 (!%p4258_p7), %vm5052_vm1, %v5051_v3  ;;  %vm1021_vm2 = vcmask (!%p4258_p7), 523264   ;;  %vm1065_vm3 = vcmask (!%p4258_p7), 253952  }
  0x34   : > { %s5894_s9 = sld [smem:[#allocation16_spill]] (!%p4258_p7)  ;;  %s5895_s22 = sld [smem:[#allocation18_spill]] (!%p4258_p7) }
  0x35   : > { %s970_s21 = scalar_lea.vmem %s5888_s16, %s5227_s6 }
  0x36   : > { %s5308_s26 = scalar_lea.vmem %s5889_s15, %s4245_s27 }
  0x38   : > { %v981_v1 = vld [vmem:[%s5891_s7] sm:$0xff] (!%p4258_p7) }
  0x39   : > { %v982_v2 = vadd.f32 (!%p4258_p7), %v981_v1, %v980_v0  ;;  %v4851_v4 = vld [vmem:[%s5893_s28] sm:$0xff] (!%p4258_p7)   ;;  %v4852_v5 = vld [vmem:[%s5893_s28 + $0x8] sm:$0xff] (!%p4258_p7)   ;;  %v4853_v6 = vld [vmem:[%s5893_s28 + $0x10] sm:$0xff] (!%p4258_p7)  }
  0x3a   : > { %4686 = vmatpush3.bf16.msra.mxu0 %v4851_v4  ;;  %s985_s5 = scalar_lea.vmem %s5894_s9, %s5892_s29  ;;  %v4854_v7 = vld [vmem:[%s5893_s28 + $0x18] sm:$0xff]   ;;  %v996_v10 = vld [vmem:[%s5895_s22] sm:$0x1] }
  0x3b   : > { %984 = vst.msk [vmem:[#allocation2] sm:$0xff] %vm983_vm0, %v982_v2  ;;  %4687 = vmatprep.subr.bf16.mxu0 %v5051_v3  ;;  %v986_v8 = vld [vmem:[%s985_s5] sm:$0x1] }
  0x3c   : > { %v987_v9 = vpack.c.bf16 %v986_v8, %v986_v8 }
  0x3e   : > { %4688 = vmatpush3.bf16.msra.mxu0 %v4852_v5 }
  0x3f   : > { %4689 = vmatprep.subr.bf16.mxu0 %v5051_v3 }
  0x42   : > { %4690 = vmatpush3.bf16.msra.mxu0 %v4853_v6 }
  0x43   : > { %4691 = vmatprep.subr.bf16.mxu0 %v5051_v3 }
  0x46   : > { %4692 = vmatpush3.bf16.msra.mxu0 %v4854_v7 }
  0x49   : > { %4694 = vmatmul.mubr.msk.bf16.vlgmr.msra.gmra.mrb[0].mxu0 %vm1021_vm2, %v987_v9 }
 0x11c   : > { %v1059_v11 = vpop.f32.mrb[0].mxu0 }
 0x11d   : > { %v1060_v12 = vadd.f32 %v1059_v11, %v996_v10  ;;  %v4695_v13 = vpop.f32.mrb[1].mxu0 }
 0x11e   : > { %v1062_v14 = vpop.f32.mrb[2].mxu0 }
 0x11f   : > { %1066 = vst.msk [vmem:[#allocation3] sm:$0x1] %vm1065_vm3, %v1060_v12  ;;  %v4696_v15 = vpop.f32.mrb[3].mxu0 }
 0x120 PF: > { %s5896_s29 = sld [smem:[#allocation11_spill]]  ;;  %v5053_v17 = vmov 0.0   ;;  %vm5054_vm4 = vmmov 0   ;;  %v5339_v19 = vld [vmem:[#allocation2] sm:$0xff]  ;;  %vm1092_vm5 = vcmask 261120   ;;  %s5897_s27 = sld [smem:[#allocation20_spill]]  ;;  %v1136_v35 = vlaneseq }
 0x121   : > { %4697 = vmatprep.subr.bf16.mxu0 %v5053_v17  ;;  %4705 = vmatprep.subr.bf16.mxu1 %v5053_v17  ;;  %v1068_v20 = vpack.c.bf16 %v5339_v19, %v5339_v19  ;;  %s5055_s1 = smov 96   ;;  %s5056_s8 = smov 120   ;;  %vm1151_vm6 = vcmask 64512   ;;  %vm1216_vm8 = vcmask 1043456  }
 0x122   : > { %4701 = vmatprep.mubr.msk.bf16.mxu0 %vm5054_vm4, %v5053_v17  ;;  %4707 = vmatprep.mubr.msk.bf16.mxu1 %vm5054_vm4, %v5053_v17  ;;  %s5057_s24 = smov 88   ;;  %v5373_v36 = vshrl.u32 %v1136_v35, 7  ;;  %v5375_v37 = vand.u32 127, %v1136_v35  ;;  %s5058_s9 = smov 64  }
 0x123   : > { %s5059_s5 = smov 56   ;;  %s5060_s30 = smov 112  }
 0x124   : > { %vm1140_vm7 = vcmp.ge.s32.totalorder %v5373_v36, %v5375_v37  ;;  %s5061_s4 = smov 80   ;;  %s5899_s2 = sld [smem:[#allocation12_spill]] }
 0x125   : > { %s5062_s7 = smov 72   ;;  %s5063_s22 = smov 104  }
 0x126   : > { %v4855_v16 = vld [vmem:[%s5896_s29] sm:$0xff]   ;;  %v4856_v18 = vld [vmem:[%s5896_s29 + $0x8] sm:$0xff]   ;;  %s5898_s3 = scalar_lea.vmem %s5897_s27, %s5227_s6  ;;  %s5064_s29 = smov 48  }
 0x127   : > { %4698 = vmatpush3.bf16.msra.mxu0 %v4855_v16  ;;  %v4264_v21 = vld [vmem:[%s5898_s3] ss:$0 sm:$0xff]  ;;  %s5065_s16 = smov 40   ;;  %s5900_s3 = sld [smem:[#allocation22_spill]] }
 0x128   : > { %4699 = vmatprep.subr.bf16.mxu0 %v5053_v17 }
 0x12a   : > { %v1141_v8 = vld [vmem:[%s5899_s2] sm:$0xf]  ;;  %v1142_v10 = vld [vmem:[%s5899_s2 + $0x4] sm:$0xf] }
 0x12b   : > { %4700 = vmatpush3.bf16.msra.mxu0 %v4856_v18  ;;  %v1424_v9 = vsel %vm1216_vm8, %v1141_v8, 0  ;;  %v1378_v11 = vsel %vm1216_vm8, %v1142_v10, 0 }
 0x12c   : > { %4711 = vmatprep.subr.bf16.mxu0 %v5053_v17 }
 0x12e   : > { %4702 = vmatmul.mubr.msk.bf16.vlgmr.msra.gmra.mrb[0].mxu0 %vm1092_vm5, %v1068_v20 }
 0x12f   : > { %4713 = vmatprep.mubr.msk.bf16.mxu0 %vm5054_vm4, %v5053_v17 }
 0x201   : > { %v1130_v22 = vpop.f32.mrb[0].mxu0 }
 0x202   : > { %v1131_v23 = vadd.f32 %v4264_v21, %v1130_v22  ;;  %v4703_v24 = vpop.f32.mrb[1].mxu0 }
 0x203   : > { %v1133_v25 = vpop.f32.mrb[2].mxu0 }
 0x204   : > { %v1145_v26 = vmul.f32 0.35355338, %v1131_v23  ;;  %v5355_v27 = vpack.c.bf16 %v1131_v23, %v1131_v23  ;;  %v4704_v28 = vpop.f32.mrb[3].mxu0 }
 0x206   : > { %v5357_v29 = vpack.c.bf16 %v1145_v26, %v1145_v26  ;;  %1149 = vrot.lane.b32.xlu0 %v5355_v27, %s5055_s1  ;;  %s5901_s1 = scalar_lea.vmem %s5900_s3, %s5227_s6  ;;  %s5906_s3 = scalar_lea.vmem %s5832_s14, %s5227_s6 }
 0x208   : > { %1262 = vrot.lane.b32.xlu1 %v5357_v29, %s5056_s8 }
 0x20a   : > { %1264 = vrot.lane.b32.xlu0 %v5355_v27, %s5057_s24  ;;  %s5902_s24 = scalar_lea.vmem %s5828_s10, %s5227_s6 }
 0x278   : > { %v1150_v30 = vpop.permute.xlu0 %1149 }
 0x279   : > { %v1156_v31 = vsel %vm1151_vm6, %v1150_v30, 0 }
 0x27a   : > { %4706 = vmatpush3.bf16.xpose.msra.mxu1 %v1156_v31  ;;  %v1263_v34 = vpop.permute.xlu1 %1262 }
 0x27b   : > { %4717 = vmatprep.subr.bf16.mxu1 %v5053_v17 }
 0x27c   : > { %v1265_v32 = vpop.permute.xlu0 %1264 }
 0x27d   : > { %v1270_v33 = vsel %vm1151_vm6, %v1265_v32, 0 }
 0x281   : > { %4708 = vmatmul.mubr.msk.bf16.vlgmr.msra.gmra.mrb[0].mxu1 %vm1151_vm6, %v5357_v29 }
 0x282   : > { %4718 = vmatpush3.bf16.xpose.msra.mxu1 %v1270_v33  ;;  %4719 = vmatprep.mubr.msk.bf16.mxu1 %vm5054_vm4, %v5053_v17 }
 0x283   : > { %4729 = vmatprep.subr.bf16.mxu1 %v5053_v17 }
 0x289   : > { %4720 = vmatmul.mubr.msk.bf16.vlgmr.msra.gmra.mrb[4].mxu1 %vm1151_vm6, %v1263_v34 }
 0x28a   : > { %4731 = vmatprep.mubr.msk.bf16.mxu1 %vm5054_vm4, %v5053_v17  ;;  %4730 = vmatpush3.bf16.msra.mxu1 %v1378_v11 }
 0x28b   : > { %4741 = vmatprep.subr.bf16.mxu1 %v5053_v17 }
 0x354   : > { %v1192_v38 = vpop.f32.mrb[0].mxu1 }
 0x355   : > { %v1198_v39 = vsel %vm1140_vm7, %v1192_v38, -1e+30  ;;  %v4709_v40 = vpop.f32.mrb[1].mxu1 }
 0x356   : > { %v1195_v41 = vpop.f32.mrb[2].mxu1  ;;  %v1199_v42 = vsel %vm1151_vm6, %v1198_v39, -inf }
 0x357   : > { %1200 = vmax.xlane.f32.xlu1 %v1199_v42  ;;  %v4710_v43 = vpop.f32.mrb[3].mxu1 }
 0x35c   : > { %v1306_v44 = vpop.f32.mrb[4].mxu1 }
 0x35d   : > { %v1312_v45 = vsel %vm1140_vm7, %v1306_v44, -1e+30  ;;  %v4721_v46 = vpop.f32.mrb[5].mxu1 }
 0x35e   : > { %v1309_v47 = vpop.f32.mrb[6].mxu1  ;;  %v1313_v48 = vsel %vm1151_vm6, %v1312_v45, -inf }
 0x35f   : > { %1314 = vmax.xlane.f32.xlu0 %v1313_v48  ;;  %v4722_v49 = vpop.f32.mrb[7].mxu1 }
 0x3e4   : > { %v1201_v50 = vpop.xlane.xlu1 %1200 }
 0x3e5   : > { %v1202_v51 = vsub.f32 %v1198_v39, %v1201_v50 }
 0x3e7   : > { %v1203_v52 = vmul.f32 1.442695, %v1202_v51 }
 0x3e9   : > { %4987 = vpow2.f32 %v1203_v52 }
 0x3ec   : > { %v1315_v53 = vpop.xlane.xlu0 %1314 }
 0x3ed   : > { %v1316_v54 = vsub.f32 %v1312_v45, %v1315_v53 }
 0x3ef   : > { %v1317_v55 = vmul.f32 1.442695, %v1316_v54 }
 0x3f1   : > { %4989 = vpow2.f32 %v1317_v55 }
 0x3f3   : > { %v4988_v56 = vpop.eup %4987 }
 0x3f4   : > { %v1205_v57 = vsel %vm1151_vm6, %v4988_v56, 0.0 }
 0x3f5   : > { %1206 = vadd.xlane.f32.xlu0 %v1205_v57 }
 0x3fb   : > { %v4990_v58 = vpop.eup %4989 }
 0x3fc   : > { %v1319_v59 = vsel %vm1151_vm6, %v4990_v58, 0.0 }
 0x3fd   : > { %1320 = vadd.xlane.f32.xlu1 %v1319_v59  ;;  %v1143_v59 = vld [vmem:[%s5899_s2 + $0x8] sm:$0xf] }
 0x40b   : > { %1211 = vrot.lane.b32.xlu0 %v5355_v27, %s5058_s9 }
 0x40e   : > { %1325 = vrot.lane.b32.xlu1 %v5355_v27, %s5059_s5 }
 0x40f   : > { %1466 = vrot.lane.b32.xlu0 %v5357_v29, %s5060_s30  ;;  %s5903_s30 = scalar_lea.vmem %s5829_s11, %s5227_s6 }
 0x412   : > { %1468 = vrot.lane.b32.xlu1 %v5355_v27, %s5061_s4 }
 0x482   : > { %v1207_v60 = vpop.xlane.xlu0 %1206 }
 0x483   : > { %4991 = vrcp.f32 %v1207_v60  ;;  %v1582_v60 = vsel %vm1216_vm8, %v1143_v59, 0  ;;  %v5479_v59 = vsub.s32 0, %v5373_v36 }
 0x486   : > { %v1212_v61 = vpop.permute.xlu0 %1211 }
 0x487   : > { %v1218_v62 = vsel %vm1216_vm8, %v1212_v61, 0 }
 0x488   : > { %4712 = vmatpush3.bf16.msra.mxu0 %v1218_v62 }
 0x489   : > { %4723 = vmatprep.subr.bf16.mxu0 %v5053_v17 }
 0x48a   : > { %v1321_v63 = vpop.xlane.xlu1 %1320  ;;  %v1467_v26 = vpop.permute.xlu0 %1466 }
 0x48b   : > { %4993 = vrcp.f32 %v1321_v63 }
 0x48d   : > { %v4992_v0 = vpop.eup %4991 }
 0x48e   : > { %v1209_v1 = vmul.f32 %v4992_v0, %v4988_v56  ;;  %v1326_v2 = vpop.permute.xlu1 %1325 }
 0x48f   : > { %v1331_v4 = vsel %vm1216_vm8, %v1326_v2, 0 }
 0x490   : > { %v1210_v3 = vpack.c.bf16 %v1209_v1, %v1209_v1 }
 0x492   : > { %4714 = vmatmul.mubr.msk.bf16.vlgmr.msra.gmra.mrb[4].mxu0 %vm1151_vm6, %v1210_v3  ;;  %v1469_v18 = vpop.permute.xlu1 %1468 }
 0x493   : > { %4724 = vmatpush3.bf16.msra.mxu0 %v1331_v4  ;;  %4725 = vmatprep.mubr.msk.bf16.mxu0 %vm5054_vm4, %v5053_v17  ;;  %v1474_v24 = vsel %vm1151_vm6, %v1469_v18, 0 }
 0x494   : > { %4735 = vmatprep.subr.bf16.mxu0 %v5053_v17 }
 0x495   : > { %v4994_v5 = vpop.eup %4993 }
 0x496   : > { %v1323_v6 = vmul.f32 %v4994_v5, %v4990_v58 }
 0x498   : > { %v1324_v7 = vpack.c.bf16 %v1323_v6, %v1323_v6 }
 0x49a   : > { %4726 = vmatmul.mubr.msk.bf16.vlgmr.msra.gmra.mrb[8].mxu0 %vm1151_vm6, %v1324_v7 }
 0x49b   : > { %4737 = vmatprep.mubr.msk.bf16.mxu0 %vm5054_vm4, %v5053_v17  ;;  %4736 = vmatpush3.bf16.msra.mxu0 %v1424_v9 }
 0x49c   : > { %4747 = vmatprep.subr.bf16.mxu0 %v5053_v17 }
 0x565   : > { %v1254_v12 = vpop.f32.mrb[4].mxu0 }
 0x566   : > { %v1260_v13 = vpack.c.bf16 %v1254_v12, %v1254_v12  ;;  %v4715_v14 = vpop.f32.mrb[5].mxu0 }
 0x567   : > { %v1257_v15 = vpop.f32.mrb[6].mxu0  ;;  %v1144_v14 = vld [vmem:[%s5899_s2 + $0xc] sm:$0xf] }
 0x568   : > { %v4716_v16 = vpop.f32.mrb[7].mxu0  ;;  %4738 = vmatmul.mubr.msk.bf16.vlgmr.msra.gmra.mrb[12].mxu0 %vm1151_vm6, %v1260_v13  ;;  %v1741_v15 = vsel %vm1216_vm8, %v1144_v14, 0 }
 0x569   : > { %4749 = vmatprep.mubr.msk.bf16.mxu0 %vm5054_vm4, %v5053_v17 }
 0x56d   : > { %v1367_v20 = vpop.f32.mrb[8].mxu0 }
 0x56e   : > { %v1373_v21 = vpack.c.bf16 %v1367_v20, %v1367_v20  ;;  %v4727_v22 = vpop.f32.mrb[9].mxu0 }
 0x56f   : > { %v1370_v23 = vpop.f32.mrb[10].mxu0 }
 0x570   : > { %v4728_v25 = vpop.f32.mrb[11].mxu0  ;;  %4732 = vmatmul.mubr.msk.bf16.vlgmr.msra.gmra.mrb[8].mxu1 %vm1151_vm6, %v1373_v21 }
 0x571   : > { %4742 = vmatpush3.bf16.xpose.msra.mxu1 %v1474_v24  ;;  %4743 = vmatprep.mubr.msk.bf16.mxu1 %vm5054_vm4, %v5053_v17 }
 0x572   : > { %4753 = vmatprep.subr.bf16.mxu1 %v5053_v17 }
 0x578   : > { %4744 = vmatmul.mubr.msk.bf16.vlgmr.msra.gmra.mrb[12].mxu1 %vm1151_vm6, %v1467_v26 }
 0x579   : > { %4755 = vmatprep.mubr.msk.bf16.mxu1 %vm5054_vm4, %v5053_v17  ;;  %4754 = vmatpush3.bf16.msra.mxu1 %v1582_v60 }
 0x57a   : > { %4765 = vmatprep.subr.bf16.mxu1 %v5053_v17 }
 0x63b   : > { %v1460_v28 = vpop.f32.mrb[12].mxu0 }
 0x63c   : > { %v4739_v30 = vpop.f32.mrb[13].mxu0 }
 0x63d   : > { %v1463_v31 = vpop.f32.mrb[14].mxu0 }
 0x63e   : > { %v4740_v32 = vpop.f32.mrb[15].mxu0 }
 0x643   : > { %v1414_v33 = vpop.f32.mrb[8].mxu1 }
 0x644   : > { %v5420_v34 = vadd.f32 %v1460_v28, %v1414_v33  ;;  %v4733_v35 = vpop.f32.mrb[9].mxu1  ;;  %v4857_v33 = vld [vmem:[%s5254_s25] sm:$0xff]  }
 0x645   : > { %v1417_v38 = vpop.f32.mrb[10].mxu1  ;;  %v1823_v35 = vld [vmem:[#allocation3] sm:$0x1] }
 0x646   : > { %v4734_v39 = vpop.f32.mrb[11].mxu1  ;;  %v1824_v38 = vpack.c.bf16 %v1823_v35, %v1823_v35 }
 0x64b   : > { %v1510_v40 = vpop.f32.mrb[12].mxu1 }
 0x64c   : > { %v1516_v41 = vsel %vm1140_vm7, %v1510_v40, -1e+30  ;;  %v4745_v42 = vpop.f32.mrb[13].mxu1  ;;  %v4280_v40 = vld [vmem:[%s5901_s1] ss:$0 sm:$0xff] }
 0x64d   : > { %v1513_v43 = vpop.f32.mrb[14].mxu1  ;;  %v1517_v44 = vsel %vm1151_vm6, %v1516_v41, -inf }
 0x64e   : > { %1518 = vmax.xlane.f32.xlu1 %v1517_v44  ;;  %v4746_v45 = vpop.f32.mrb[15].mxu1 }
 0x65f   : > { %1627 = vrot.lane.b32.xlu1 %v5355_v27, %s5062_s7  ;;  %s5904_s7 = scalar_lea.vmem %s5830_s12, %s5227_s6 }
 0x663   : > { %1625 = vrot.lane.b32.xlu1 %v5357_v29, %s5063_s22 }
 0x6db   : > { %v1519_v46 = vpop.xlane.xlu1 %1518 }
 0x6dc   : > { %v1520_v47 = vsub.f32 %v1516_v41, %v1519_v46 }
 0x6de   : > { %v1521_v48 = vmul.f32 1.442695, %v1520_v47 }
 0x6df   : > { %v1628_v55 = vpop.permute.xlu1 %1627 }
 0x6e0   : > { %4995 = vpow2.f32 %v1521_v48  ;;  %v1633_v57 = vsel %vm1151_vm6, %v1628_v55, 0 }
 0x6e3   : > { %v1626_v58 = vpop.permute.xlu1 %1625 }
 0x6ea   : > { %v4996_v49 = vpop.eup %4995 }
 0x6eb   : > { %v1523_v50 = vsel %vm1151_vm6, %v4996_v49, 0.0 }
 0x6ec   : > { %1524 = vadd.xlane.f32.xlu0 %v1523_v50 }
 0x702   : > { %1529 = vrot.lane.b32.xlu0 %v5355_v27, %s5064_s29 }
 0x779   : > { %v1525_v51 = vpop.xlane.xlu0 %1524 }
 0x77a   : > { %4997 = vrcp.f32 %v1525_v51 }
 0x77d   : > { %v1530_v52 = vpop.permute.xlu0 %1529 }
 0x77e   : > { %v1535_v53 = vsel %vm1216_vm8, %v1530_v52, 0 }
 0x77f   : > { %4748 = vmatpush3.bf16.msra.mxu0 %v1535_v53 }
 0x780   : > { %4759 = vmatprep.subr.bf16.mxu0 %v5053_v17 }
 0x784   : > { %v4998_v29 = vpop.eup %4997 }
 0x785   : > { %v1527_v54 = vmul.f32 %v4998_v29, %v4996_v49 }
 0x787   : > { %v1528_v56 = vpack.c.bf16 %v1527_v54, %v1527_v54 }
 0x789   : > { %4750 = vmatmul.mubr.msk.bf16.vlgmr.msra.gmra.mrb[16].mxu0 %vm1151_vm6, %v1528_v56 }
 0x78a   : > { %4760 = vmatpush3.bf16.xpose.msra.mxu0 %v1633_v57  ;;  %4761 = vmatprep.mubr.msk.bf16.mxu0 %vm5054_vm4, %v5053_v17  ;;  %v1829_v57 = vld [vmem:[%s5902_s24] sm:$0x1] }
 0x78b   : > { %4771 = vmatprep.subr.bf16.mxu0 %v5053_v17 }
 0x791   : > { %4762 = vmatmul.mubr.msk.bf16.vlgmr.msra.gmra.mrb[20].mxu0 %vm1151_vm6, %v1626_v58 }
 0x792   : > { %4773 = vmatprep.mubr.msk.bf16.mxu0 %vm5054_vm4, %v5053_v17  ;;  %4772 = vmatpush3.bf16.msra.mxu0 %v1741_v15 }
 0x85c   : > { %v1571_v61 = vpop.f32.mrb[16].mxu0 }
 0x85d   : > { %v1577_v62 = vpack.c.bf16 %v1571_v61, %v1571_v61  ;;  %v4751_v63 = vpop.f32.mrb[17].mxu0  ;;  %v4281_v61 = vld [vmem:[%s5903_s30] ss:$0 sm:$0xff]  ;;  %s5910_s30 = sld [smem:[#allocation4_spill]] }
 0x85e   : > { %v1574_v0 = vpop.f32.mrb[18].mxu0  ;;  %v4282_v63 = vld [vmem:[%s5904_s7] ss:$0 sm:$0xff] }
 0x85f   : > { %v4752_v1 = vpop.f32.mrb[19].mxu0  ;;  %4756 = vmatmul.mubr.msk.bf16.vlgmr.msra.gmra.mrb[16].mxu1 %vm1151_vm6, %v1577_v62 }
 0x860   : > { %4767 = vmatprep.mubr.msk.bf16.mxu1 %vm5054_vm4, %v5053_v17 }
 0x863   : > { %p4459_p8 = scmp.ne.s32.totalorder %s5910_s30, 1 }
 0x864   : > { %v1669_v2 = vpop.f32.mrb[20].mxu0  ;;  %s5911_s7 = sld [smem:[#allocation28_spill]] (!%p4459_p8)  ;;  %vm5068_vm9 = vmmov (!%p4459_p8), 0   ;;  %s5912_s29 = sld [smem:[#allocation29_spill]] (!%p4459_p8) }
 0x865   : > { %v1675_v3 = vsel %vm1140_vm7, %v1669_v2, -1e+30  ;;  %v4763_v4 = vpop.f32.mrb[21].mxu0 }
 0x866   : > { %v1672_v5 = vpop.f32.mrb[22].mxu0  ;;  %v1676_v6 = vsel %vm1151_vm6, %v1675_v3, -inf }
 0x867   : > { %1677 = vmax.xlane.f32.xlu0 %v1676_v6  ;;  %v4764_v7 = vpop.f32.mrb[23].mxu0 }
 0x87d   : > { %1688 = vrot.lane.b32.xlu0 %v5355_v27, %s5065_s16  ;;  %s5905_s16 = scalar_lea.vmem %s5831_s13, %s5227_s6 }
 0x8f4   : > { %v1678_v8 = vpop.xlane.xlu0 %1677 }
 0x8f5   : > { %v1679_v9 = vsub.f32 %v1675_v3, %v1678_v8 }
 0x8f7   : > { %v1680_v10 = vmul.f32 1.442695, %v1679_v9 }
 0x8f8   : > { %v1689_v11 = vpop.permute.xlu0 %1688 }
 0x8f9   : > { %4999 = vpow2.f32 %v1680_v10  ;;  %v1694_v12 = vsel %vm1216_vm8, %v1689_v11, 0  ;;  %v1920_v10 = vld [vmem:[%s5285_s23] sm:$0xff] }
 0x8fa   : > { %4766 = vmatpush3.bf16.msra.mxu1 %v1694_v12  ;;  %v1928_v11 = vld [vmem:[%s5285_s23 + $0x40] sm:$0xff]  ;;  %v1921_v12 = vld [vmem:[%s5285_s23 + $0x8] sm:$0xff] }
 0x8fb   : > { %4777 = vmatprep.subr.bf16.mxu1 %v5053_v17  ;;  %v4288_v14 = vcombine.low %v1920_v10, %v1928_v11 }
 0x903   : > { %v5000_v37 = vpop.eup %4999 }
 0x904   : > { %v1682_v13 = vsel %vm1151_vm6, %v5000_v37, 0.0 }
 0x905   : > { %1683 = vadd.xlane.f32.xlu1 %v1682_v13  ;;  %v1929_v13 = vld [vmem:[%s5285_s23 + $0x48] sm:$0xff] }
 0x906   : > { %v4290_v15 = vcombine.low %v1921_v12, %v1929_v13 }
 0x932   : > { %v1618_v16 = vpop.f32.mrb[16].mxu1 }
 0x933   : > { %v1624_v27 = vadd.f32 %v1618_v16, %v5420_v34  ;;  %v4757_v18 = vpop.f32.mrb[17].mxu1  ;;  %v4858_v34 = vld [vmem:[%s5254_s25 + $0x8] sm:$0xff]   ;;  %v4291_v16 = vcombine.high %v1921_v12, %v1929_v13  ;;  %v1950_v13 = vld [vmem:[%s5285_s23 + $0xf0] sm:$0xff] }
 0x934   : > { %v1621_v20 = vpop.f32.mrb[18].mxu1  ;;  %v1944_v18 = vld [vmem:[%s5285_s23 + $0xc0] sm:$0xff] }
 0x935   : > { %v4758_v21 = vpop.f32.mrb[19].mxu1  ;;  %v1937_v20 = vld [vmem:[%s5285_s23 + $0x88] sm:$0xff] }
 0x992   : > { %v1684_v22 = vpop.xlane.xlu1 %1683 }
 0x993   : > { %5001 = vrcp.f32 %v1684_v22  ;;  %v1945_v22 = vld [vmem:[%s5285_s23 + $0xc8] sm:$0xff] }
 0x99d   : > { %v5002_v23 = vpop.eup %5001 }
 0x99e   : > { %v1686_v24 = vmul.f32 %v5002_v23, %v5000_v37  ;;  %v4289_v37 = vcombine.high %v1920_v10, %v1928_v11 }
 0x9a0   : > { %v1687_v25 = vpack.c.bf16 %v1686_v24, %v1686_v24  ;;  %2199 = vmatprep.subr.bf16.mxu0 %v4289_v37  ;;  %v4306_v24 = vcombine.low %v1937_v20, %v1945_v22  ;;  %v1942_v37 = vld [vmem:[%s5285_s23 + $0xb0] sm:$0xff] }
 0x9a2   : > { %4768 = vmatmul.mubr.msk.bf16.vlgmr.msra.gmra.mrb[20].mxu1 %vm1151_vm6, %v1687_v25  ;;  %v4307_v25 = vcombine.high %v1937_v20, %v1945_v22 }
 0x9a3   : > { %4781 = vmatprep.mubr.msk.bf16.mxu1 %vm5054_vm4, %v5053_v17  ;;  %4778 = vmatpush3.bf16.msra.mxu1 %v4857_v33  ;;  %v1931_v33 = vld [vmem:[%s5285_s23 + $0x58] sm:$0xff] }
 0x9a4   : > { %4779 = vmatprep.subr.bf16.mxu1 %v5053_v17 }
 0x9a7   : > { %4780 = vmatpush3.bf16.msra.mxu1 %v4858_v34 }
 0x9a8   : > { %2240 = vmatprep.subr.bf16.mxu1 %v4291_v16 }
 0x9aa   : > { %4782 = vmatmul.mubr.msk.bf16.vlgmr.msra.gmra.mrb[24].mxu1 %vm1092_vm5, %v1824_v38 }
 0x9ab   : > { %2241 = vmatpush1.bf16.msra.mxu1 %v4290_v15  ;;  %v1951_v15 = vld [vmem:[%s5285_s23 + $0xf8] sm:$0xff] }
 0x9ac   : > { %2242 = vmatprep.subr.bf16.mxu1 %v4307_v25  ;;  %v4861_v25 = vld [vmem:[%s5291_s20] sm:$0xff]  }
 0x9af   : > { %2243 = vmatpush1.bf16.msra.mxu1 %v4306_v24  ;;  %v4860_v24 = vld [vmem:[%s5291_s20 + $0xc0] sm:$0xff]  }
 0xa75   : > { %v1730_v26 = vpop.f32.mrb[20].mxu1 }
 0xa76   : > { %v1736_v28 = vpack.c.bf16 %v1730_v26, %v1730_v26  ;;  %v4769_v30 = vpop.f32.mrb[21].mxu1  ;;  %v1922_v26 = vld [vmem:[%s5285_s23 + $0x10] sm:$0xff] }
 0xa77   : > { %v1733_v31 = vpop.f32.mrb[22].mxu1  ;;  %v1923_v30 = vld [vmem:[%s5285_s23 + $0x18] sm:$0xff] }
 0xa78   : > { %v4770_v32 = vpop.f32.mrb[23].mxu1  ;;  %4774 = vmatmul.mubr.msk.bf16.vlgmr.msra.gmra.mrb[24].mxu0 %vm1151_vm6, %v1736_v28  ;;  %v1930_v28 = vld [vmem:[%s5285_s23 + $0x50] sm:$0xff]  ;;  %v5066_v31 = vmov 0   ;;  %v4294_v35 = vcombine.low %v1923_v30, %v1931_v33  ;;  %v4295_v38 = vcombine.high %v1923_v30, %v1931_v33  ;;  %v4864_v30 = vld [vmem:[%s5291_s20 + $0xc8] sm:$0xff]  }
 0xa79   : > { %2200 = vmatpush1.bf16.msra.mxu0 %v4288_v14  ;;  %2231 = vmatprep.mubr.bf16.mxu0 %v5066_v31  ;;  %v4293_v32 = vcombine.high %v1922_v26, %v1930_v28  ;;  %v4292_v34 = vcombine.low %v1922_v26, %v1930_v28  ;;  %v1943_v14 = vld [vmem:[%s5285_s23 + $0xb8] sm:$0xff]  ;;  %v4862_v26 = vld [vmem:[%s5291_s20 + $0x80] sm:$0xff]   ;;  %v4863_v28 = vld [vmem:[%s5291_s20 + $0x48] sm:$0xff]  }
 0xa7a   : > { %2272 = vmatprep.mubr.bf16.mxu1 %v5066_v31  ;;  %2322 = vmatprep.subr.bf16.mxu1 %v4295_v38  ;;  %v4319_v20 = vcombine.high %v1943_v14, %v1951_v15  ;;  %v4318_v22 = vcombine.low %v1943_v14, %v1951_v15  ;;  %v4867_v33 = vld [vmem:[%s5291_s20 + $0x50] sm:$0xff]  }
 0xa7b   : > { %v4870_v38 = vld [vmem:[%s5291_s20 + $0x90] sm:$0xff]  }
 0xa7d   : > { %v1879_v52 = vpop.f32.mrb[24].mxu1 }
 0xa7e   : > { %v4783_v53 = vpop.f32.mrb[25].mxu1  ;;  %v1880_v58 = vadd.f32 %v1879_v52, %v1829_v57 }
 0xa7f   : > { %v1882_v29 = vpop.f32.mrb[26].mxu1 }
 0xa80   : > { %v4784_v54 = vpop.f32.mrb[27].mxu1  ;;  %v1888_v0 = vrot.slane %v1880_v58, %v5479_v59  ;;  %v1924_v29 = vld [vmem:[%s5285_s23 + $0x20] sm:$0xff] }
 0xa81   : > { %v1932_v54 = vld [vmem:[%s5285_s23 + $0x60] sm:$0xff] }
 0xa82   : > { %v4297_v58 = vcombine.high %v1924_v29, %v1932_v54 }
 0xb4b   : > { %v1777_v39 = vpop.f32.mrb[24].mxu0 }
 0xb4c   : > { %v1783_v41 = vadd.f32 %v1777_v39, %v1624_v27  ;;  %v4775_v42 = vpop.f32.mrb[25].mxu0  ;;  %v1936_v27 = vld [vmem:[%s5285_s23 + $0x80] sm:$0xff] }
 0xb4d   : > { %v1780_v43 = vpop.f32.mrb[26].mxu0  ;;  %v4305_v21 = vcombine.high %v1936_v27, %v1944_v18  ;;  %v4304_v23 = vcombine.low %v1936_v27, %v1944_v18  ;;  %v4317_v18 = vcombine.high %v1942_v37, %v1950_v13 }
 0xb4e   : > { %v1791_v44 = vadd.f32 %v4280_v40, %v1783_v41  ;;  %v4776_v45 = vpop.f32.mrb[27].mxu0  ;;  %v4286_v43 = vld [vmem:[%s5905_s16] ss:$0 sm:$0xff] }
 0xb4f   : > { %2201 = vmatprep.subr.bf16.mxu0 %v4305_v21  ;;  %v4287_v45 = vld [vmem:[%s5906_s3] ss:$0 sm:$0xff]  ;;  %v4316_v21 = vcombine.low %v1942_v37, %v1950_v13 }
 0xb50   : > { %v1792_v46 = vadd.f32 %v1791_v44, %v5339_v19  ;;  %2202 = vmatpush1.bf16.msra.mxu0 %v4304_v23  ;;  %v4859_v23 = vld [vmem:[%s5291_s20 + $0x40] sm:$0xff]  }
 0xb51   : > { %2281 = vmatprep.subr.bf16.mxu0 %v4293_v32  ;;  %v4866_v32 = vld [vmem:[%s5291_s20 + $0x88] sm:$0xff]  }
 0xb52   : > { %v1795_v47 = vsel %vm1092_vm5, %v1792_v46, 0.0 }
 0xb53   : > { %1796 = vadd.xlane.f32.xlu1 %v1795_v47  ;;  %v1938_v47 = vld [vmem:[%s5285_s23 + $0x90] sm:$0xff] }
 0xbe0   : > { %v1797_v17 = vpop.xlane.xlu1 %1796 }
 0xbe1   : > { %v1799_v48 = vmul.f32 0.03125, %v1797_v17  ;;  %v1946_v17 = vld [vmem:[%s5285_s23 + $0xd0] sm:$0xff] }
 0xbe2   : > { %v4309_v52 = vcombine.high %v1938_v47, %v1946_v17 }
 0xbe3   : > { %v1800_v49 = vsub.f32 %v1792_v46, %v1799_v48  ;;  %v1939_v48 = vld [vmem:[%s5285_s23 + $0x98] sm:$0xff] }
 0xbe5   : > { %v1801_v50 = vmul.f32 %v1800_v49, %v1800_v49 }
 0xbe7   : > { %v1802_v51 = vsel %vm1092_vm5, %v1801_v50, 0.0 }
 0xbe8   : > { %1803 = vadd.xlane.f32.xlu1 %v1802_v51 }
 0xc75   : > { %v1804_v55 = vpop.xlane.xlu1 %1803 }
 0xc76   : > { %v1805_v56 = vmul.f32 0.03125, %v1804_v55  ;;  %v1925_v55 = vld [vmem:[%s5285_s23 + $0x28] sm:$0xff] }
 0xc78   : > { %v1806_v19 = vadd.f32 1e-05, %v1805_v56  ;;  %v1933_v56 = vld [vmem:[%s5285_s23 + $0x68] sm:$0xff] }
 0xc7a   : > { %5003 = vrsqrt.f32 %v1806_v19  ;;  %v4308_v19 = vcombine.low %v1938_v47, %v1946_v17  ;;  %v4879_v47 = vld [vmem:[%s5291_s20 + $0x68] sm:$0xff]  }
 0xc7b   : > { %v4880_v17 = vld [vmem:[%s5291_s20 + $0xe8] sm:$0xff]  }
 0xc84   : > { %v5004_v60 = vpop.eup %5003 }
 0xc85   : > { %v1808_v62 = vmul.f32 %v5004_v60, %v1800_v49  ;;  %v1947_v49 = vld [vmem:[%s5285_s23 + $0xd8] sm:$0xff]  ;;  %v4299_v60 = vcombine.high %v1925_v55, %v1933_v56 }
 0xc86   : > { %v4311_v53 = vcombine.high %v1939_v48, %v1947_v49  ;;  %v4310_v57 = vcombine.low %v1939_v48, %v1947_v49  ;;  %v4881_v48 = vld [vmem:[%s5291_s20 + $0x28] sm:$0xff]  }
 0xc87   : > { %v1815_v1 = vmul.f32 %v4281_v61, %v1808_v62  ;;  %v1940_v61 = vld [vmem:[%s5285_s23 + $0xa0] sm:$0xff]  ;;  %v4882_v49 = vld [vmem:[%s5291_s20 + $0xa8] sm:$0xff]  }
 0xc88   : > { %v1948_v62 = vld [vmem:[%s5285_s23 + $0xe0] sm:$0xff] }
 0xc89   : > { %v1822_v2 = vadd.f32 %v4282_v63, %v1815_v1  ;;  %v1941_v63 = vld [vmem:[%s5285_s23 + $0xa8] sm:$0xff]  ;;  %v4296_v1 = vcombine.low %v1924_v29, %v1932_v54  ;;  %v4886_v29 = vld [vmem:[%s5291_s20 + $0xb0] sm:$0xff]   ;;  %v4887_v54 = vld [vmem:[%s5291_s20 + $0x78] sm:$0xff]  }
 0xc8b   : > { %v1889_v3 = vadd.f32 %v1888_v0, %v1822_v2  ;;  %v1949_v0 = vld [vmem:[%s5285_s23 + $0xe8] sm:$0xff]  ;;  %v4298_v2 = vcombine.low %v1925_v55, %v1933_v56  ;;  %v4888_v55 = vld [vmem:[%s5291_s20 + $0xf8] sm:$0xff]  }
 0xc8c   : > { %v4314_v10 = vcombine.low %v1941_v63, %v1949_v0  ;;  %v4889_v56 = vld [vmem:[%s5291_s20 + $0x38] sm:$0xff]  }
 0xc8d   : > { %v1892_v4 = vsel %vm1092_vm5, %v1889_v3, 0.0 }
 0xc8e   : > { %1893 = vadd.xlane.f32.xlu1 %v1892_v4  ;;  %v4315_v4 = vcombine.high %v1941_v63, %v1949_v0  ;;  %v1966_v63 = vsub.s32 2, %v5373_v36 }
 0xd1b   : > { %v1894_v5 = vpop.xlane.xlu1 %1893 }
 0xd1c   : > { %v1895_v6 = vmul.f32 0.03125, %v1894_v5  ;;  %v1926_v5 = vld [vmem:[%s5285_s23 + $0x30] sm:$0xff] }
 0xd1e   : > { %v1896_v7 = vsub.f32 %v1889_v3, %v1895_v6  ;;  %v4313_v3 = vcombine.high %v1940_v61, %v1948_v62  ;;  %v1934_v6 = vld [vmem:[%s5285_s23 + $0x70] sm:$0xff] }
 0xd1f   : > { %v4301_v11 = vcombine.high %v1926_v5, %v1934_v6  ;;  %v4300_v16 = vcombine.low %v1926_v5, %v1934_v6 }
 0xd20   : > { %v1897_v8 = vmul.f32 %v1896_v7, %v1896_v7 }
 0xd22   : > { %v1898_v9 = vsel %vm1092_vm5, %v1897_v8, 0.0  ;;  %v1935_v8 = vld [vmem:[%s5285_s23 + $0x78] sm:$0xff] }
 0xd23   : > { %1899 = vadd.xlane.f32.xlu1 %v1898_v9  ;;  %v4312_v9 = vcombine.low %v1940_v61, %v1948_v62 }
 0xdb0   : > { %v1900_v39 = vpop.xlane.xlu1 %1899 }
 0xdb1   : > { %v1901_v40 = vmul.f32 0.03125, %v1900_v39  ;;  %v4871_v39 = vld [vmem:[%s5291_s20 + $0x58] sm:$0xff]  }
 0xdb3   : > { %v1902_v41 = vadd.f32 1e-05, %v1901_v40  ;;  %v4872_v40 = vld [vmem:[%s5291_s20 + $0xd8] sm:$0xff]  }
 0xdb5   : > { %5005 = vrsqrt.f32 %v1902_v41  ;;  %v4873_v41 = vld [vmem:[%s5291_s20 + $0x18] sm:$0xff]  }
 0xdbf   : > { %v5006_v42 = vpop.eup %5005 }
 0xdc0   : > { %v1904_v44 = vmul.f32 %v5006_v42, %v1896_v7  ;;  %v1927_v7 = vld [vmem:[%s5285_s23 + $0x38] sm:$0xff]  ;;  %s5907_s23 = sld [smem:[#allocation13_spill]] }
 0xdc1   : > { %v4303_v12 = vcombine.high %v1927_v7, %v1935_v8  ;;  %v4302_v27 = vcombine.low %v1927_v7, %v1935_v8  ;;  %v4874_v42 = vld [vmem:[%s5291_s20 + $0x98] sm:$0xff]  }
 0xdc2   : > { %v1911_v46 = vmul.f32 %v4286_v43, %v1904_v44  ;;  %v4875_v43 = vld [vmem:[%s5291_s20 + $0x60] sm:$0xff]  }
 0xdc3   : > { %v4876_v44 = vld [vmem:[%s5291_s20 + $0xe0] sm:$0xff]  }
 0xdc4   : > { %v5522_v50 = vadd.f32 %v4287_v45, %v1911_v46  ;;  %v4877_v45 = vld [vmem:[%s5291_s20 + $0x20] sm:$0xff]  }
 0xdc5   : > { %v4878_v46 = vld [vmem:[%s5291_s20 + $0xa0] sm:$0xff]  }
 0xdc6   : > { %v5526_v51 = vpack.c.bf16 %v5522_v50, %v5522_v50  ;;  %v5602_v61 = vld [vmem:[%s5907_s23 + $0x8] sm:$0xff]  ;;  %v5611_v0 = vld [vmem:[%s5907_s23] sm:$0xff] }
 0xdc8   : > { %4320 = vmatmul.mubr.msk.bf16.vlgmr.msra.gmra.mrb[28].mxu0 %vm1092_vm5, %v5526_v51  ;;  %4321 = vmatmul.mubr.msk.bf16.vlgmr.msra.gmra.mrb[28].mxu1 %vm1092_vm5, %v5526_v51 }
 0xdc9   : > { %2282 = vmatpush1.bf16.msra.mxu0 %v4292_v34  ;;  %2323 = vmatpush1.bf16.msra.mxu1 %v4294_v35  ;;  %v4868_v34 = vld [vmem:[%s5291_s20 + $0xd0] sm:$0xff]  }
 0xdca   : > { %2283 = vmatprep.subr.bf16.mxu0 %v4309_v52  ;;  %2324 = vmatprep.subr.bf16.mxu1 %v4311_v53  ;;  %v4869_v35 = vld [vmem:[%s5291_s20 + $0x10] sm:$0xff]  }
 0xdcb   : > { %2313 = vmatprep.mubr.bf16.mxu0 %v5066_v31  ;;  %2354 = vmatprep.mubr.bf16.mxu1 %v5066_v31  ;;  %v4884_v52 = vld [vmem:[%s5291_s20 + $0xf0] sm:$0xff]  }
 0xdcc   : > { %v4885_v53 = vld [vmem:[%s5291_s20 + $0x30] sm:$0xff]  }
 0xdcd   : > { %2284 = vmatpush1.bf16.msra.mxu0 %v4308_v19  ;;  %2325 = vmatpush1.bf16.msra.mxu1 %v4310_v57  ;;  %v4890_v19 = vld [vmem:[%s5291_s20 + $0xb8] sm:$0xff]   ;;  %v4891_v57 = vld [vmem:[%s5291_s20 + $0x140] sm:$0xff]  }
 0xdce   : > { %2363 = vmatprep.subr.bf16.mxu0 %v4297_v58  ;;  %2404 = vmatprep.subr.bf16.mxu1 %v4299_v60  ;;  %v4892_v58 = vld [vmem:[%s5291_s20 + $0x1c0] sm:$0xff]   ;;  %v1982_v60 = vsub.s32 6, %v5373_v36 }
 0xdd0   : > { %4322 = vmatmul.mubr.msk.bf16.vlgmr.msra.gmra.mrb[32].mxu0 %vm1092_vm5, %v5526_v51  ;;  %4323 = vmatmul.mubr.msk.bf16.vlgmr.msra.gmra.mrb[32].mxu1 %vm1092_vm5, %v5526_v51  ;;  %v5607_v62 = vrot.slane %v5602_v61, %v1982_v60 }
 0xdd1   : > { %2364 = vmatpush1.bf16.msra.mxu0 %v4296_v1  ;;  %2405 = vmatpush1.bf16.msra.mxu1 %v4298_v2  ;;  %v1962_v1 = vsub.s32 1, %v5373_v36  ;;  %v1970_v2 = vsub.s32 3, %v5373_v36 }
 0xdd2   : > { %2365 = vmatprep.subr.bf16.mxu0 %v4313_v3  ;;  %2406 = vmatprep.subr.bf16.mxu1 %v4315_v4  ;;  %v1959_v3 = vrot.slane %v5611_v0, %v5479_v59  ;;  %v1967_v4 = vrot.slane %v5611_v0, %v1966_v63 }
 0xdd3   : > { %2395 = vmatprep.mubr.bf16.mxu0 %v5066_v31  ;;  %2436 = vmatprep.mubr.bf16.mxu1 %v5066_v31  ;;  %v1963_v5 = vrot.slane %v5611_v0, %v1962_v1  ;;  %v1971_v6 = vrot.slane %v5611_v0, %v1970_v2 }
 0xdd5   : > { %2366 = vmatpush1.bf16.msra.mxu0 %v4312_v9  ;;  %2407 = vmatpush1.bf16.msra.mxu1 %v4314_v10 }
 0xdd6   : > { %2445 = vmatprep.subr.bf16.mxu0 %v4301_v11  ;;  %2486 = vmatprep.subr.bf16.mxu1 %v4303_v12 }
 0xdd8   : > { %4324 = vmatmul.mubr.msk.bf16.vlgmr.msra.gmra.mrb[36].mxu0 %vm1092_vm5, %v5526_v51  ;;  %4325 = vmatmul.mubr.msk.bf16.vlgmr.msra.gmra.mrb[36].mxu1 %vm1092_vm5, %v5526_v51 }
 0xdd9   : > { %2446 = vmatpush1.bf16.msra.mxu0 %v4300_v16  ;;  %2487 = vmatpush1.bf16.msra.mxu1 %v4302_v27  ;;  %v1978_v16 = vsub.s32 5, %v5373_v36  ;;  %v1986_v27 = vsub.s32 7, %v5373_v36 }
 0xdda   : > { %2447 = vmatprep.subr.bf16.mxu0 %v4317_v18  ;;  %2488 = vmatprep.subr.bf16.mxu1 %v4319_v20 }
 0xddb   : > { %2477 = vmatprep.mubr.bf16.mxu0 %v5066_v31  ;;  %2518 = vmatprep.mubr.bf16.mxu1 %v5066_v31  ;;  %v4865_v31 = vld [vmem:[%s5291_s20 + $0x8] sm:$0xff]  }
 0xddd   : > { %2448 = vmatpush1.bf16.msra.mxu0 %v4316_v21  ;;  %2489 = vmatpush1.bf16.msra.mxu1 %v4318_v22 }
 0xdde   : > { %4506 = vmatprep.subr.bf16.mxu0 %v4859_v23  ;;  %4528 = vmatprep.subr.bf16.mxu1 %v4860_v24 }
 0xde0   : > { %4326 = vmatmul.mubr.msk.bf16.vlgmr.msra.gmra.mrb[40].mxu0 %vm1092_vm5, %v5526_v51  ;;  %4327 = vmatmul.mubr.msk.bf16.vlgmr.msra.gmra.mrb[40].mxu1 %vm1092_vm5, %v5526_v51  ;;  %v4883_v51 = vld [vmem:[%s5291_s20 + $0x70] sm:$0xff]  }
 0xde1   : > { %4507 = vmatpush3.bf16.msra.mxu0 %v4861_v25  ;;  %4529 = vmatpush3.bf16.msra.mxu1 %v4862_v26 }
 0xde2   : > { %4508 = vmatprep.subr.bf16.mxu0 %v4863_v28  ;;  %4530 = vmatprep.subr.bf16.mxu1 %v4864_v30  ;;  %v1979_v28 = vrot.slane %v5611_v0, %v1978_v16  ;;  %v1987_v30 = vrot.slane %v5611_v0, %v1986_v27 }
 0xde5   : > { %4509 = vmatpush3.bf16.msra.mxu0 %v4865_v31  ;;  %4531 = vmatpush3.bf16.msra.mxu1 %v4866_v32  ;;  %v4893_v31 = vld [vmem:[%s5291_s20 + $0x100] sm:$0xff]  }
 0xde6   : > { %4510 = vmatprep.subr.bf16.mxu0 %v4867_v33  ;;  %4532 = vmatprep.subr.bf16.mxu1 %v4868_v34  ;;  %v4894_v32 = vld [vmem:[%s5291_s20 + $0x180] sm:$0xff]  }
 0xde9   : > { %4511 = vmatpush3.bf16.msra.mxu0 %v4869_v35  ;;  %4533 = vmatpush3.bf16.msra.mxu1 %v4870_v38  ;;  %v4895_v35 = vld [vmem:[%s5291_s20 + $0x148] sm:$0xff]  }
 0xdea   : > { %4512 = vmatprep.subr.bf16.mxu0 %v4871_v39  ;;  %4534 = vmatprep.subr.bf16.mxu1 %v4872_v40  ;;  %v4896_v38 = vld [vmem:[%s5291_s20 + $0x1c8] sm:$0xff]  }
 0xded   : > { %4513 = vmatpush3.bf16.msra.mxu0 %v4873_v41  ;;  %4535 = vmatpush3.bf16.msra.mxu1 %v4874_v42 }
 0xdee   : > { %4514 = vmatprep.subr.bf16.mxu0 %v4875_v43  ;;  %4536 = vmatprep.subr.bf16.mxu1 %v4876_v44 }
 0xdf1   : > { %4515 = vmatpush3.bf16.msra.mxu0 %v4877_v45  ;;  %4537 = vmatpush3.bf16.msra.mxu1 %v4878_v46 }
 0xdf2   : > { %4516 = vmatprep.subr.bf16.mxu0 %v4879_v47  ;;  %4538 = vmatprep.subr.bf16.mxu1 %v4880_v17  ;;  %v4897_v47 = vld [vmem:[%s5291_s20 + $0x108] sm:$0xff]  }
 0xdf3   : > { %v4898_v17 = vld [vmem:[%s5291_s20 + $0x188] sm:$0xff]  }
 0xdf5   : > { %4517 = vmatpush3.bf16.msra.mxu0 %v4881_v48  ;;  %4539 = vmatpush3.bf16.msra.mxu1 %v4882_v49 }
 0xdf6   : > { %4518 = vmatprep.subr.bf16.mxu0 %v4883_v51  ;;  %4540 = vmatprep.subr.bf16.mxu1 %v4884_v52  ;;  %v4899_v51 = vld [vmem:[%s5291_s20 + $0x150] sm:$0xff]  }
 0xdf7   : > { %v4900_v52 = vld [vmem:[%s5291_s20 + $0x1d0] sm:$0xff]  }
 0xdf9   : > { %4519 = vmatpush3.bf16.msra.mxu0 %v4885_v53  ;;  %4541 = vmatpush3.bf16.msra.mxu1 %v4886_v29 }
 0xdfa   : > { %4520 = vmatprep.subr.bf16.mxu0 %v4887_v54  ;;  %4542 = vmatprep.subr.bf16.mxu1 %v4888_v55  ;;  %v1999_v54 = vrot.slane %v5602_v61, %v1966_v63 }
 0xdfd   : > { %4521 = vmatpush3.bf16.msra.mxu0 %v4889_v56  ;;  %4543 = vmatpush3.bf16.msra.mxu1 %v4890_v19  ;;  %v4901_v19 = vld [vmem:[%s5291_s20 + $0x110] sm:$0xff]  }
 0xdfe   : > { %4550 = vmatprep.subr.bf16.mxu0 %v4891_v57  ;;  %4572 = vmatprep.subr.bf16.mxu1 %v4892_v58  ;;  %v4902_v57 = vld [vmem:[%s5291_s20 + $0x190] sm:$0xff]   ;;  %v4903_v58 = vld [vmem:[%s5291_s20 + $0x158] sm:$0xff]  }
 0xe9b   : > { %v2233_v7 = vpop.f32.mrb[28].mxu0  ;;  %v2274_v8 = vpop.f32.mrb[28].mxu1 }
 0xe9c   : > { %v2234_v9 = vadd.f32 %v2233_v7, %v1959_v3  ;;  %v2275_v10 = vadd.f32 %v2274_v8, %v1967_v4  ;;  %v2235_v11 = vpop.f32.mrb[29].mxu0  ;;  %v2276_v12 = vpop.f32.mrb[29].mxu1  ;;  %v4904_v3 = vld [vmem:[%s5291_s20 + $0x1d8] sm:$0xff]  }
 0xe9d   : > { %v2236_v37 = vadd.f32 %v2235_v11, %v1963_v5  ;;  %v2277_v13 = vadd.f32 %v2276_v12, %v1971_v6  ;;  %v2237_v14 = vpop.f32.mrb[30].mxu0  ;;  %v2278_v15 = vpop.f32.mrb[30].mxu1  ;;  %v4906_v11 = vld [vmem:[%s5291_s20 + $0x198] sm:$0xff]   ;;  %v1974_v12 = vsub.s32 4, %v5373_v36 }
 0xe9e   : > { %v2527_v18 = vmax.f32 %v2234_v9, 0.0  ;;  %v2529_v20 = vmax.f32 %v2275_v10, 0.0  ;;  %v2238_v21 = vpop.f32.mrb[31].mxu0  ;;  %v2279_v22 = vpop.f32.mrb[31].mxu1  ;;  %v4905_v10 = vld [vmem:[%s5291_s20 + $0x118] sm:$0xff]   ;;  %v4907_v14 = vld [vmem:[%s5291_s20 + $0x160] sm:$0xff]  }
 0xe9f   : > { %v2528_v23 = vmax.f32 %v2236_v37, 0.0  ;;  %v2530_v24 = vmax.f32 %v2277_v13, 0.0  ;;  %v4908_v15 = vld [vmem:[%s5291_s20 + $0x1e0] sm:$0xff]   ;;  %v4911_v22 = vld [vmem:[%s5291_s20 + $0x168] sm:$0xff]  }
 0xea0   : > { %v2543_v33 = vpack.c.bf16 %v2527_v18, %v2527_v18  ;;  %v2545_v34 = vpack.c.bf16 %v2529_v20, %v2529_v20  ;;  %v2007_v18 = vrot.slane %v5602_v61, %v1974_v12  ;;  %v4909_v20 = vld [vmem:[%s5291_s20 + $0x120] sm:$0xff]  }
 0xea1   : > { %v2544_v25 = vpack.c.bf16 %v2528_v23, %v2528_v23  ;;  %v2546_v26 = vpack.c.bf16 %v2530_v24, %v2530_v24  ;;  %v4910_v21 = vld [vmem:[%s5291_s20 + $0x1a0] sm:$0xff]   ;;  %v4912_v23 = vld [vmem:[%s5291_s20 + $0x1e8] sm:$0xff]  }
 0xea3   : > { %v5636_v39 = vpop.f32.mrb[32].mxu0  ;;  %v5638_v40 = vpop.f32.mrb[32].mxu1  ;;  %3622 = vmatprep.mubr.bf16.mxu0 %v2544_v25  ;;  %3662 = vmatprep.mubr.bf16.mxu1 %v2546_v26 }
 0xea4   : > { %v2317_v41 = vpop.f32.mrb[33].mxu0  ;;  %v2358_v42 = vpop.f32.mrb[33].mxu1  ;;  %3623 = vmatmul.mubr.bf16.vlgmr.msra.gmra.mrb[44].mxu0 %v2543_v33  ;;  %3663 = vmatmul.mubr.bf16.vlgmr.msra.gmra.mrb[44].mxu1 %v2545_v34  ;;  %v4913_v34 = vld [vmem:[%s5291_s20 + $0x128] sm:$0xff]  }
 0xea5   : > { %v2318_v43 = vadd.f32 %v2317_v41, %v1979_v28  ;;  %v2359_v44 = vadd.f32 %v2358_v42, %v1987_v30  ;;  %4551 = vmatpush3.bf16.msra.mxu0 %v4893_v31  ;;  %4573 = vmatpush3.bf16.msra.mxu1 %v4894_v32  ;;  %v2319_v45 = vpop.f32.mrb[34].mxu0  ;;  %v2360_v46 = vpop.f32.mrb[34].mxu1 }
 0xea6   : > { %v2320_v48 = vpop.f32.mrb[35].mxu0  ;;  %v2361_v49 = vpop.f32.mrb[35].mxu1  ;;  %4552 = vmatprep.subr.bf16.mxu0 %v4895_v35  ;;  %4574 = vmatprep.subr.bf16.mxu1 %v4896_v38  ;;  %v4914_v35 = vld [vmem:[%s5291_s20 + $0x1a8] sm:$0xff]   ;;  %v1975_v38 = vrot.slane %v5611_v0, %v1974_v12  ;;  %v1995_v45 = vrot.slane %v5602_v61, %v1962_v1  ;;  %v2003_v46 = vrot.slane %v5602_v61, %v1970_v2  ;;  %v4920_v1 = vld [vmem:[%s5291_s20 + $0x1f8] sm:$0xff]   ;;  %v4933_v12 = vld [vmem:[%s5291_s20 + $0x210] sm:$0xff]  }
 0xea7   : > { %v2532_v53 = vmax.f32 %v2318_v43, 0.0  ;;  %v2534_v29 = vmax.f32 %v2359_v44, 0.0  ;;  %v4915_v43 = vld [vmem:[%s5291_s20 + $0x170] sm:$0xff]   ;;  %v4919_v48 = vld [vmem:[%s5291_s20 + $0x178] sm:$0xff]  }
 0xea8   : > { %v4916_v44 = vld [vmem:[%s5291_s20 + $0x1f0] sm:$0xff]   ;;  %v4921_v2 = vld [vmem:[%s5291_s20 + $0x138] sm:$0xff]  }
 0xea9   : > { %v2548_v55 = vpack.c.bf16 %v2532_v53, %v2532_v53  ;;  %v2550_v56 = vpack.c.bf16 %v2534_v29, %v2534_v29  ;;  %4553 = vmatpush3.bf16.msra.mxu0 %v4897_v47  ;;  %4575 = vmatpush3.bf16.msra.mxu1 %v4898_v17  ;;  %v2316_v47 = vadd.f32 %v5636_v39, %v1975_v38  ;;  %v4923_v39 = vld [vmem:[%s5291_s20 + $0x240] sm:$0xff]   ;;  %v4948_v38 = vld [vmem:[%s5291_s20 + $0x2f0] sm:$0xff]  }
 0xeaa   : > { %4554 = vmatprep.subr.bf16.mxu0 %v4899_v51  ;;  %4576 = vmatprep.subr.bf16.mxu1 %v4900_v52  ;;  %v4922_v52 = vld [vmem:[%s5291_s20 + $0x1b8] sm:$0xff]  }
 0xeab   : > { %v5649_v4 = vpop.f32.mrb[36].mxu0  ;;  %v2438_v5 = vpop.f32.mrb[36].mxu1  ;;  %3702 = vmatprep.mubr.bf16.mxu0 %v2548_v55  ;;  %3742 = vmatprep.mubr.bf16.mxu1 %v2550_v56  ;;  %v2531_v53 = vmax.f32 %v2316_v47, 0.0  ;;  %v4925_v56 = vld [vmem:[%s5291_s20 + $0x200] sm:$0xff]  }
 0xeac   : > { %v5651_v63 = vadd.f32 %v2438_v5, %v1999_v54  ;;  %v2399_v6 = vpop.f32.mrb[37].mxu0  ;;  %v2440_v7 = vpop.f32.mrb[37].mxu1  ;;  %v4927_v5 = vld [vmem:[%s5291_s20 + $0x248] sm:$0xff]  }
 0xead   : > { %4555 = vmatpush3.bf16.msra.mxu0 %v4901_v19  ;;  %4577 = vmatpush3.bf16.msra.mxu1 %v4902_v57  ;;  %v2401_v8 = vpop.f32.mrb[38].mxu0  ;;  %v2442_v9 = vpop.f32.mrb[38].mxu1  ;;  %v2400_v49 = vadd.f32 %v2399_v6, %v1995_v45  ;;  %v2441_v51 = vadd.f32 %v2440_v7, %v2003_v46  ;;  %v2547_v19 = vpack.c.bf16 %v2531_v53, %v2531_v53  ;;  %v4928_v6 = vld [vmem:[%s5291_s20 + $0x2c8] sm:$0xff]   ;;  %v4952_v45 = vld [vmem:[%s5291_s20 + $0x2f8] sm:$0xff]   ;;  %v4955_v46 = vld [vmem:[%s5291_s20 + $0x340] sm:$0xff]  }
 0xeae   : > { %v2402_v37 = vpop.f32.mrb[39].mxu0  ;;  %v2443_v13 = vpop.f32.mrb[39].mxu1  ;;  %4556 = vmatprep.subr.bf16.mxu0 %v4903_v58  ;;  %4578 = vmatprep.subr.bf16.mxu1 %v4904_v3  ;;  %v4926_v58 = vld [vmem:[%s5291_s20 + $0x280] sm:$0xff]   ;;  %v4929_v8 = vld [vmem:[%s5291_s20 + $0x208] sm:$0xff]  }
 0xeaf   : > { %v2536_v54 = vmax.f32 %v2400_v49, 0.0  ;;  %v2538_v55 = vmax.f32 %v2441_v51, 0.0  ;;  %v4930_v9 = vld [vmem:[%s5291_s20 + $0x288] sm:$0xff]   ;;  %v4934_v37 = vld [vmem:[%s5291_s20 + $0x290] sm:$0xff]   ;;  %v4935_v13 = vld [vmem:[%s5291_s20 + $0x258] sm:$0xff]  }
 0xeb0   : > { %v4959_v49 = vld [vmem:[%s5291_s20 + $0x348] sm:$0xff]  }
 0xeb1   : > { %4557 = vmatpush3.bf16.msra.mxu0 %v4905_v10  ;;  %4579 = vmatpush3.bf16.msra.mxu1 %v4906_v11  ;;  %v2552_v3 = vpack.c.bf16 %v2536_v54, %v2536_v54  ;;  %v2554_v7 = vpack.c.bf16 %v2538_v55, %v2538_v55  ;;  %v4931_v10 = vld [vmem:[%s5291_s20 + $0x250] sm:$0xff]   ;;  %v4962_v53 = vld [vmem:[%s5291_s20 + $0x388] sm:$0xff]   ;;  %v4967_v55 = vld [vmem:[%s5291_s20 + $0x358] sm:$0xff]  }
 0xeb2   : > { %4558 = vmatprep.subr.bf16.mxu0 %v4907_v14  ;;  %4580 = vmatprep.subr.bf16.mxu1 %v4908_v15  ;;  %v4932_v11 = vld [vmem:[%s5291_s20 + $0x2d0] sm:$0xff]   ;;  %v4936_v14 = vld [vmem:[%s5291_s20 + $0x2d8] sm:$0xff]  }
 0xeb3   : > { %v2479_v24 = vpop.f32.mrb[40].mxu0  ;;  %v2520_v25 = vpop.f32.mrb[40].mxu1  ;;  %v4937_v15 = vld [vmem:[%s5291_s20 + $0x218] sm:$0xff]   ;;  %v4966_v54 = vld [vmem:[%s5291_s20 + $0x390] sm:$0xff]  }
 0xeb4   : > { %v5663_v26 = vadd.f32 %v2479_v24, %v2007_v18  ;;  %v5666_v28 = vadd.f32 %v2520_v25, %v5607_v62  ;;  %v5668_v30 = vpop.f32.mrb[41].mxu0  ;;  %v5670_v31 = vpop.f32.mrb[41].mxu1  ;;  %v1983_v62 = vrot.slane %v5611_v0, %v1982_v60  ;;  %v4917_v60 = vld [vmem:[%s5291_s20 + $0x130] sm:$0xff]   ;;  %v4938_v18 = vld [vmem:[%s5291_s20 + $0x298] sm:$0xff]   ;;  %v4943_v24 = vld [vmem:[%s5291_s20 + $0x268] sm:$0xff]  }
 0xeb5   : > { %4559 = vmatpush3.bf16.msra.mxu0 %v4909_v20  ;;  %4581 = vmatpush3.bf16.msra.mxu1 %v4910_v21  ;;  %v2483_v32 = vpop.f32.mrb[42].mxu0  ;;  %v2524_v33 = vpop.f32.mrb[42].mxu1  ;;  %v4918_v0 = vld [vmem:[%s5291_s20 + $0x1b0] sm:$0xff]   ;;  %v4939_v20 = vld [vmem:[%s5291_s20 + $0x260] sm:$0xff]   ;;  %v4944_v25 = vld [vmem:[%s5291_s20 + $0x2e8] sm:$0xff]  }
 0xeb6   : > { %v2484_v41 = vpop.f32.mrb[43].mxu0  ;;  %v2525_v42 = vpop.f32.mrb[43].mxu1  ;;  %4560 = vmatprep.subr.bf16.mxu0 %v4911_v22  ;;  %4582 = vmatprep.subr.bf16.mxu1 %v4912_v23  ;;  %v2357_v17 = vadd.f32 %v5638_v40, %v1983_v62  ;;  %v4924_v40 = vld [vmem:[%s5291_s20 + $0x2c0] sm:$0xff]   ;;  %v4945_v32 = vld [vmem:[%s5291_s20 + $0x228] sm:$0xff]   ;;  %v1991_v33 = vrot.slane %v5602_v61, %v5479_v59  ;;  %v2011_v62 = vrot.slane %v5602_v61, %v1978_v16 }
 0xeb7   : > { %v4940_v21 = vld [vmem:[%s5291_s20 + $0x2e0] sm:$0xff]   ;;  %v2019_v41 = vrot.slane %v5602_v61, %v1986_v27  ;;  %v4949_v42 = vld [vmem:[%s5291_s20 + $0x230] sm:$0xff]   ;;  %v4953_v61 = vld [vmem:[%s5291_s20 + $0x238] sm:$0xff]  }
 0xeb8   : > { %v2533_v29 = vmax.f32 %v2357_v17, 0.0  ;;  %v4941_v22 = vld [vmem:[%s5291_s20 + $0x220] sm:$0xff]   ;;  %v2398_v59 = vadd.f32 %v5649_v4, %v1991_v33  ;;  %v2482_v16 = vadd.f32 %v5668_v30, %v2011_v62  ;;  %v4954_v4 = vld [vmem:[%s5291_s20 + $0x2b8] sm:$0xff]  }
 0xeb9   : > { %4561 = vmatpush3.bf16.msra.mxu0 %v4913_v34  ;;  %4583 = vmatpush3.bf16.msra.mxu1 %v4914_v35  ;;  %v4942_v23 = vld [vmem:[%s5291_s20 + $0x2a0] sm:$0xff]   ;;  %v4946_v34 = vld [vmem:[%s5291_s20 + $0x2a8] sm:$0xff]   ;;  %v4947_v35 = vld [vmem:[%s5291_s20 + $0x270] sm:$0xff]   ;;  %v2523_v36 = vadd.f32 %v5670_v31, %v2019_v41 }
 0xeba   : > { %4562 = vmatprep.subr.bf16.mxu0 %v4915_v43  ;;  %4584 = vmatprep.subr.bf16.mxu1 %v4916_v44  ;;  %v2549_v57 = vpack.c.bf16 %v2533_v29, %v2533_v29  ;;  %v4950_v43 = vld [vmem:[%s5291_s20 + $0x2b0] sm:$0xff]   ;;  %v4951_v44 = vld [vmem:[%s5291_s20 + $0x278] sm:$0xff]   ;;  %v2535_v27 = vmax.f32 %v2398_v59, 0.0  ;;  %v2540_v47 = vmax.f32 %v2482_v16, 0.0  ;;  %v4957_v30 = vld [vmem:[%s5291_s20 + $0x300] sm:$0xff]  }
 0xebb   : > { %v2542_v17 = vmax.f32 %v2523_v36, 0.0  ;;  %v4963_v29 = vld [vmem:[%s5291_s20 + $0x350] sm:$0xff]   ;;  %v4328_v33 = vld [vmem:[%s964_s19] ss:$0 sm:$0xff] }
 0xebc   : > { %v2551_v31 = vpack.c.bf16 %v2535_v27, %v2535_v27  ;;  %v2556_v51 = vpack.c.bf16 %v2540_v47, %v2540_v47 }
 0xebd   : > { %4563 = vmatpush3.bf16.msra.mxu0 %v4917_v60  ;;  %4585 = vmatpush3.bf16.msra.mxu1 %v4918_v0  ;;  %v2537_v60 = vmax.f32 %v5651_v63, 0.0  ;;  %v4956_v0 = vld [vmem:[%s5291_s20 + $0x3c0] sm:$0xff]   ;;  %v4960_v63 = vld [vmem:[%s5291_s20 + $0x3c8] sm:$0xff]  }
 0xebe   : > { %4564 = vmatprep.subr.bf16.mxu0 %v4919_v48  ;;  %4586 = vmatprep.subr.bf16.mxu1 %v4920_v1  ;;  %v4958_v48 = vld [vmem:[%s5291_s20 + $0x380] sm:$0xff]  }
 0xebf   : > { %v2553_v1 = vpack.c.bf16 %v2537_v60, %v2537_v60 }
 0xec1   : > { %4565 = vmatpush3.bf16.msra.mxu0 %v4921_v2  ;;  %4587 = vmatpush3.bf16.msra.mxu1 %v4922_v52  ;;  %v2558_v2 = vpack.c.bf16 %v2542_v17, %v2542_v17  ;;  %v4961_v52 = vld [vmem:[%s5291_s20 + $0x308] sm:$0xff]  }
 0xec2   : > { %4594 = vmatprep.subr.bf16.mxu0 %v4923_v39  ;;  %4616 = vmatprep.subr.bf16.mxu1 %v4924_v40  ;;  %v4964_v39 = vld [vmem:[%s5291_s20 + $0x3d0] sm:$0xff]  }
 0xec3   : > { %v4965_v40 = vld [vmem:[%s5291_s20 + $0x310] sm:$0xff]  }
 0xec4   : > { %3703 = vmatmul.mubr.bf16.vlgmr.msra.gmra.mrb[48].mxu0 %v2547_v19  ;;  %3743 = vmatmul.mubr.bf16.vlgmr.msra.gmra.mrb[48].mxu1 %v2549_v57  ;;  %v4969_v19 = vld [vmem:[%s5291_s20 + $0x318] sm:$0xff]  }
 0xec5   : > { %4595 = vmatpush3.bf16.msra.mxu0 %v4925_v56  ;;  %3782 = vmatprep.mubr.bf16.mxu0 %v2552_v3  ;;  %v4968_v56 = vld [vmem:[%s5291_s20 + $0x3d8] sm:$0xff]   ;;  %v4972_v3 = vld [vmem:[%s5291_s20 + $0x3e0] sm:$0xff]  }
 0xec6   : > { %4617 = vmatpush3.bf16.msra.mxu1 %v4926_v58  ;;  %3822 = vmatprep.mubr.bf16.mxu1 %v2554_v7  ;;  %v4970_v57 = vld [vmem:[%s5291_s20 + $0x398] sm:$0xff]   ;;  %v4971_v58 = vld [vmem:[%s5291_s20 + $0x360] sm:$0xff]   ;;  %v4975_v7 = vld [vmem:[%s5291_s20 + $0x368] sm:$0xff]  }
 0xec7   : > { %4596 = vmatprep.subr.bf16.mxu0 %v4927_v5  ;;  %4618 = vmatprep.subr.bf16.mxu1 %v4928_v6  ;;  %v4973_v5 = vld [vmem:[%s5291_s20 + $0x320] sm:$0xff]  }
 0xec8   : > { %v4974_v6 = vld [vmem:[%s5291_s20 + $0x3a0] sm:$0xff]  }
 0xec9   : > { %4597 = vmatpush3.bf16.msra.mxu0 %v4929_v8  ;;  %v4976_v8 = vld [vmem:[%s5291_s20 + $0x3e8] sm:$0xff]  }
 0xeca   : > { %4619 = vmatpush3.bf16.msra.mxu1 %v4930_v9  ;;  %4598 = vmatprep.subr.bf16.mxu0 %v4931_v10  ;;  %v4977_v9 = vld [vmem:[%s5291_s20 + $0x328] sm:$0xff]  }
 0xecb   : > { %4620 = vmatprep.subr.bf16.mxu1 %v4932_v11  ;;  %v4978_v10 = vld [vmem:[%s5291_s20 + $0x3a8] sm:$0xff]   ;;  %v4979_v11 = vld [vmem:[%s5291_s20 + $0x370] sm:$0xff]  }
 0xecd   : > { %4599 = vmatpush3.bf16.msra.mxu0 %v4933_v12  ;;  %v4980_v12 = vld [vmem:[%s5291_s20 + $0x3f0] sm:$0xff]  }
 0xece   : > { %4621 = vmatpush3.bf16.msra.mxu1 %v4934_v37  ;;  %4600 = vmatprep.subr.bf16.mxu0 %v4935_v13  ;;  %v4981_v37 = vld [vmem:[%s5291_s20 + $0x330] sm:$0xff]  }
 0xecf   : > { %4622 = vmatprep.subr.bf16.mxu1 %v4936_v14  ;;  %v4982_v13 = vld [vmem:[%s5291_s20 + $0x3b0] sm:$0xff]   ;;  %v4983_v14 = vld [vmem:[%s5291_s20 + $0x378] sm:$0xff]  }
 0xed1   : > { %4601 = vmatpush3.bf16.msra.mxu0 %v4937_v15  ;;  %v4984_v15 = vld [vmem:[%s5291_s20 + $0x3f8] sm:$0xff]  }
 0xed2   : > { %4623 = vmatpush3.bf16.msra.mxu1 %v4938_v18  ;;  %4602 = vmatprep.subr.bf16.mxu0 %v4939_v20  ;;  %v4985_v18 = vld [vmem:[%s5291_s20 + $0x338] sm:$0xff]   ;;  %v2539_v20 = vmax.f32 %v5663_v26, 0.0 }
 0xed3   : > { %4624 = vmatprep.subr.bf16.mxu1 %v4940_v21  ;;  %v4986_v21 = vld [vmem:[%s5291_s20 + $0x3b8] sm:$0xff]  }
 0xed5   : > { %4603 = vmatpush3.bf16.msra.mxu0 %v4941_v22  ;;  %v2541_v22 = vmax.f32 %v5666_v28, 0.0 }
 0xed6   : > { %4625 = vmatpush3.bf16.msra.mxu1 %v4942_v23  ;;  %4604 = vmatprep.subr.bf16.mxu0 %v4943_v24  ;;  %v2555_v23 = vpack.c.bf16 %v2539_v20, %v2539_v20 }
 0xed7   : > { %4626 = vmatprep.subr.bf16.mxu1 %v4944_v25  ;;  %v2557_v24 = vpack.c.bf16 %v2541_v22, %v2541_v22 }
 0xed9   : > { %4605 = vmatpush3.bf16.msra.mxu0 %v4945_v32 }
 0xeda   : > { %4627 = vmatpush3.bf16.msra.mxu1 %v4946_v34  ;;  %4606 = vmatprep.subr.bf16.mxu0 %v4947_v35 }
 0xedb   : > { %4628 = vmatprep.subr.bf16.mxu1 %v4948_v38 }
 0xedd   : > { %4607 = vmatpush3.bf16.msra.mxu0 %v4949_v42 }
 0xede   : > { %4629 = vmatpush3.bf16.msra.mxu1 %v4950_v43  ;;  %4608 = vmatprep.subr.bf16.mxu0 %v4951_v44 }
 0xedf   : > { %4630 = vmatprep.subr.bf16.mxu1 %v4952_v45 }
 0xee1   : > { %4609 = vmatpush3.bf16.msra.mxu0 %v4953_v61 }
 0xee2   : > { %4631 = vmatpush3.bf16.msra.mxu1 %v4954_v4  ;;  %4638 = vmatprep.subr.bf16.mxu0 %v4955_v46 }
 0xee3   : > { %4660 = vmatprep.subr.bf16.mxu1 %v4956_v0 }
 0xee4   : > { %3783 = vmatmul.mubr.bf16.vlgmr.msra.gmra.mrb[52].mxu0 %v2551_v31 }
 0xee5   : > { %3823 = vmatmul.mubr.bf16.vlgmr.msra.gmra.mrb[52].mxu1 %v2553_v1  ;;  %4639 = vmatpush3.bf16.msra.mxu0 %v4957_v30 }
 0xee6   : > { %3862 = vmatprep.mubr.bf16.mxu0 %v2556_v51  ;;  %4661 = vmatpush3.bf16.msra.mxu1 %v4958_v48 }
 0xee7   : > { %3902 = vmatprep.mubr.bf16.mxu1 %v2558_v2  ;;  %4640 = vmatprep.subr.bf16.mxu0 %v4959_v49 }
 0xee8   : > { %4662 = vmatprep.subr.bf16.mxu1 %v4960_v63 }
 0xee9   : > { %4641 = vmatpush3.bf16.msra.mxu0 %v4961_v52 }
 0xeea   : > { %4663 = vmatpush3.bf16.msra.mxu1 %v4962_v53  ;;  %4642 = vmatprep.subr.bf16.mxu0 %v4963_v29 }
 0xeeb   : > { %4664 = vmatprep.subr.bf16.mxu1 %v4964_v39 }
 0xeed   : > { %4643 = vmatpush3.bf16.msra.mxu0 %v4965_v40 }
 0xeee   : > { %4665 = vmatpush3.bf16.msra.mxu1 %v4966_v54  ;;  %4644 = vmatprep.subr.bf16.mxu0 %v4967_v55 }
 0xeef   : > { %4666 = vmatprep.subr.bf16.mxu1 %v4968_v56 }
 0xef1   : > { %4645 = vmatpush3.bf16.msra.mxu0 %v4969_v19 }
 0xef2   : > { %4667 = vmatpush3.bf16.msra.mxu1 %v4970_v57  ;;  %4646 = vmatprep.subr.bf16.mxu0 %v4971_v58 }
 0xef3   : > { %4668 = vmatprep.subr.bf16.mxu1 %v4972_v3 }
 0xef5   : > { %4647 = vmatpush3.bf16.msra.mxu0 %v4973_v5 }
 0xef6   : > { %4669 = vmatpush3.bf16.msra.mxu1 %v4974_v6  ;;  %4648 = vmatprep.subr.bf16.mxu0 %v4975_v7 }
 0xef7   : > { %4670 = vmatprep.subr.bf16.mxu1 %v4976_v8 }
 0xef9   : > { %4649 = vmatpush3.bf16.msra.mxu0 %v4977_v9 }
 0xefa   : > { %4671 = vmatpush3.bf16.msra.mxu1 %v4978_v10  ;;  %4650 = vmatprep.subr.bf16.mxu0 %v4979_v11 }
 0xefb   : > { %4672 = vmatprep.subr.bf16.mxu1 %v4980_v12 }
 0xefd   : > { %4651 = vmatpush3.bf16.msra.mxu0 %v4981_v37 }
 0xefe   : > { %4673 = vmatpush3.bf16.msra.mxu1 %v4982_v13  ;;  %4652 = vmatprep.subr.bf16.mxu0 %v4983_v14 }
 0xeff   : > { %4674 = vmatprep.subr.bf16.mxu1 %v4984_v15 }
 0xf01   : > { %4653 = vmatpush3.bf16.msra.mxu0 %v4985_v18 }
 0xf02   : > { %4675 = vmatpush3.bf16.msra.mxu1 %v4986_v21 }
 0xf04   : > { %3863 = vmatmul.mubr.bf16.vlgmr.msra.gmra.mrb[56].mxu0 %v2555_v23  ;;  %v4458_v23 = vld [vmem:[%s970_s21] ss:$0 sm:$0xff] }
 0xf05   : > { %3903 = vmatmul.mubr.bf16.vlgmr.msra.gmra.mrb[56].mxu1 %v2557_v24 }
 0xf77   : > { %v4522_v25 = vpop.f32.mrb[44].mxu0  ;;  %v4544_v32 = vpop.f32.mrb[44].mxu1 }
 0xf78   : > { %v4523_v26 = vpop.f32.mrb[45].mxu0  ;;  %v4545_v34 = vpop.f32.mrb[45].mxu1 }
 0xf79   : > { %v4524_v35 = vadd.f32 %v4523_v26, %v4522_v25  ;;  %v4546_v38 = vadd.f32 %v4545_v34, %v4544_v32  ;;  %v4525_v62 = vpop.f32.mrb[46].mxu0  ;;  %v4547_v28 = vpop.f32.mrb[46].mxu1  ;;  %v5009_v32 = vld [vmem:[%s5911_s7] sm:$0xff] (!%p4459_p8)   ;;  %v5010_v26 = vld [vmem:[%s5911_s7 + $0x8] sm:$0xff] (!%p4459_p8)  }
 0xf7a   : > { %v4526_v41 = vpop.f32.mrb[47].mxu0  ;;  %v4548_v42 = vpop.f32.mrb[47].mxu1 }
 0xf7b   : > { %v3625_v59 = vadd.f32 %v4524_v35, %v4328_v33  ;;  %v5067_v33 = vmov (!%p4459_p8), 0.0   ;;  %v4460_v35 = vld [vmem:[%s5912_s29] ss:$0 sm:$0xff] (!%p4459_p8) }
 0xf7c   : > { %4785 = vmatprep.subr.bf16.mxu0 (!%p4459_p8), %v5067_v33  ;;  %4789 = vmatprep.mubr.msk.bf16.mxu0 (!%p4459_p8), %vm5068_vm9, %v5067_v33 }
 0xf7d   : > { %v3665_v43 = vadd.f32 %v4546_v38, %v3625_v59  ;;  %4786 = vmatpush3.bf16.msra.mxu0 (!%p4459_p8), %v5009_v32 }
 0xf7e   : > { %4787 = vmatprep.subr.bf16.mxu0 (!%p4459_p8), %v5067_v33 }
 0xf81   : > { %4788 = vmatpush3.bf16.msra.mxu0 (!%p4459_p8), %v5010_v26 }
 0xf97   : > { %v4566_v44 = vpop.f32.mrb[48].mxu0  ;;  %v4588_v45 = vpop.f32.mrb[48].mxu1 }
 0xf98   : > { %v4567_v16 = vpop.f32.mrb[49].mxu0  ;;  %v4589_v36 = vpop.f32.mrb[49].mxu1 }
 0xf99   : > { %v4568_v61 = vadd.f32 %v4567_v16, %v4566_v44  ;;  %v4590_v27 = vadd.f32 %v4589_v36, %v4588_v45  ;;  %v4569_v4 = vpop.f32.mrb[50].mxu0  ;;  %v4591_v46 = vpop.f32.mrb[50].mxu1 }
 0xf9a   : > { %v4570_v60 = vpop.f32.mrb[51].mxu0  ;;  %v4592_v0 = vpop.f32.mrb[51].mxu1 }
 0xf9b   : > { %v3705_v47 = vadd.f32 %v4568_v61, %v3665_v43 }
 0xf9d   : > { %v3745_v17 = vadd.f32 %v4590_v27, %v3705_v47 }
 0xfb7   : > { %v4610_v30 = vpop.f32.mrb[52].mxu0 }
 0xfb8   : > { %v4632_v31 = vpop.f32.mrb[52].mxu1  ;;  %v4611_v48 = vpop.f32.mrb[53].mxu0 }
 0xfb9   : > { %v4612_v1 = vadd.f32 %v4611_v48, %v4610_v30  ;;  %v4633_v49 = vpop.f32.mrb[53].mxu1  ;;  %v4613_v51 = vpop.f32.mrb[54].mxu0 }
 0xfba   : > { %v4634_v63 = vadd.f32 %v4633_v49, %v4632_v31  ;;  %v4635_v2 = vpop.f32.mrb[54].mxu1  ;;  %v4614_v52 = vpop.f32.mrb[55].mxu0 }
 0xfbb   : > { %v3785_v53 = vadd.f32 %v4612_v1, %v3745_v17  ;;  %v4636_v29 = vpop.f32.mrb[55].mxu1 }
 0xfbd   : > { %v3825_v39 = vadd.f32 %v4634_v63, %v3785_v53 }
 0xfd7   : > { %v4654_v40 = vpop.f32.mrb[56].mxu0 }
 0xfd8   : > { %v4676_v54 = vpop.f32.mrb[56].mxu1  ;;  %v4655_v55 = vpop.f32.mrb[57].mxu0 }
 0xfd9   : > { %v4656_v56 = vadd.f32 %v4655_v55, %v4654_v40  ;;  %v4677_v19 = vpop.f32.mrb[57].mxu1  ;;  %v4657_v57 = vpop.f32.mrb[58].mxu0 }
 0xfda   : > { %v4678_v58 = vadd.f32 %v4677_v19, %v4676_v54  ;;  %v4679_v3 = vpop.f32.mrb[58].mxu1  ;;  %v4658_v5 = vpop.f32.mrb[59].mxu0 }
 0xfdb   : > { %v3865_v6 = vadd.f32 %v4656_v56, %v3825_v39  ;;  %v4680_v7 = vpop.f32.mrb[59].mxu1 }
 0xfdd   : > { %v3905_v8 = vadd.f32 %v4678_v58, %v3865_v6 }
 0xfdf   : > { %v3910_v9 = vadd.f32 %v3905_v8, %v5522_v50  ;;  %v4457_v50 = vld [vmem:[%s967_s0] ss:$0 sm:$0xff] }
 0xfe1   : > { %v3913_v10 = vsel %vm1092_vm5, %v3910_v9, 0.0 }
 0xfe2   : > { %3914 = vadd.xlane.f32.xlu1 %v3913_v10 }
0x106f   : > { %v3915_v11 = vpop.xlane.xlu1 %3914 }
0x1070   : > { %v3916_v12 = vmul.f32 0.03125, %v3915_v11 }
0x1072   : > { %v3917_v37 = vsub.f32 %v3910_v9, %v3916_v12 }
0x1074   : > { %v3918_v13 = vmul.f32 %v3917_v37, %v3917_v37 }
0x1076   : > { %v3919_v14 = vsel %vm1092_vm5, %v3918_v13, 0.0 }
0x1077   : > { %3920 = vadd.xlane.f32.xlu0 %v3919_v14 }
0x1104   : > { %v3921_v15 = vpop.xlane.xlu0 %3920 }
0x1105   : > { %v3922_v18 = vmul.f32 0.03125, %v3921_v15 }
0x1107   : > { %v3923_v20 = vadd.f32 1e-05, %v3922_v18 }
0x1109   : > { %5007 = vrsqrt.f32 %v3923_v20 }
0x1113   : > { %v5008_v21 = vpop.eup %5007 }
0x1114   : > { %v3925_v22 = vmul.f32 %v5008_v21, %v3917_v37  ;;  %3944 = sbr.rel (%p4459_p8) target bundleno = 4595 (0x11f3), region = 120 }
0x1116   : > { %v3932_v24 = vmul.f32 %v4457_v50, %v3925_v22 }
0x1118   : > { %v3939_v25 = vadd.f32 %v4458_v23, %v3932_v24 }
0x111a   : > { %3940 = vst.msk [vmem:[#allocation2] sm:$0xff] %vm1092_vm5, %v3939_v25  ;;  %v3945_v34 = vpack.c.bf16 (!%p4459_p8), %v3939_v25, %v3939_v25 }
0x111c   : > { %4790 = vmatmul.mubr.msk.bf16.vlgmr.msra.gmra.mrb[0].mxu0 %vm1092_vm5, %v3945_v34 }
0x11ef   : > { %v4006_v38 = vpop.f32.mrb[0].mxu0 }
0x11f0   : > { %v4007_v62 = vadd.f32 %v4460_v35, %v4006_v38  ;;  %v4791_v28 = vpop.f32.mrb[1].mxu0 }
0x11f1   : > { %v4009_v41 = vpop.f32.mrb[2].mxu0 }
0x11f2   : > { %4012 = vst [vmem:[%s5308_s26] sm:$0xff] %v4007_v62  ;;  %v4792_v42 = vpop.f32.mrb[3].mxu0 }
0x11f3 PF: > { %s5913_s16 = sld [smem:[#allocation8_spill]]  ;;  %s5914_s4 = sld [smem:[#allocation6_spill]] }
0x11f4   : > { %s5915_s30 = sld [smem:[#allocation7_spill]]  ;;  %s5916_s24 = sld [smem:[#allocation9_spill]] }
0x11f5   : > { %s5917_s25 = sld [smem:[#allocation10_spill]] }
0x11f9   : > { %s33_s5 = sadd.s32 1, %s5913_s16  }
0x11fa   : > { %p30_p9 = scmp.ge.s32.totalorder %s33_s5, 6  }
0x11fc   :  { %32 = sbr.rel (!%p30_p9) target bundleno = 18 (0x12), region = 199 }

</bundles_post_ra>
